<compile_context>
chip_gen: v7x
topology: tpu7x:2x2x1
jax: 0.10.0
libtpu: 0.0.40
codegen_flags: <defaults>
</compile_context>

<pallas_src>
import jax
import jax.numpy as jnp
from jax.experimental import pallas as pl
from jax.experimental.pallas import tpu as pltpu


_VMEM_LIMIT = 48 * 1024 * 1024   # raise scoped VMEM above the 16/32 MiB default


# ----------------------------- shared kernel body --------------------------- #

def _sep_conv_bn_body(x, xpad_scr, dw_ref, pw_ref, shift_ref,
                      H, W, apply_relu, mxu_dtype):
    """(relu) -> depthwise 3x3 (stride 1, in-kernel zero pad) -> 1x1 MXU -> +shift."""
    if apply_relu:
        x = jnp.maximum(x, 0.0)                          # relu(0)=0, pad stays valid
    # In-kernel zero padding (VMEM scratch) -- no HBM pad round trip.
    xpad_scr[...] = jnp.zeros(xpad_scr.shape, xpad_scr.dtype)
    xpad_scr[1:H + 1, 1:W + 1, :] = x
    xp = xpad_scr[...]                                   # (H+2, W+2, Cin)

    dw = dw_ref[...]                                     # (3, 3, Cin)
    cin = xp.shape[-1]
    acc = jnp.zeros((H, W, cin), jnp.float32)
    for dy in range(3):                                  # depthwise conv on the VPU
        for dx in range(3):
            acc = acc + xp[dy:dy + H, dx:dx + W, :] * dw[dy, dx, :]

    # pointwise 1x1 conv == matmul on the MXU (bf16 in, f32 accumulate);
    # BN scale already folded into pw, only the shift remains.
    cout = pw_ref.shape[-1]
    y = jnp.dot(acc.reshape(H * W, cin).astype(mxu_dtype), pw_ref[...],
                preferred_element_type=jnp.float32)
    y = y + shift_ref[...]
    return y.reshape(H, W, cout)


# ----------------------------- Pallas kernels ------------------------------ #

def _make_sep_conv_bn_kernel(apply_relu, H, W, mxu_dtype):
    def kernel(x_ref, dw_ref, pw_ref, shift_ref, out_ref, xpad_scr):
        out_ref[0] = _sep_conv_bn_body(x_ref[0], xpad_scr, dw_ref, pw_ref,
                                       shift_ref, H, W, apply_relu, mxu_dtype)
    return kernel


def sep_conv_bn(x, layer, *, apply_relu):
    N, H, W, Cin = x.shape
    Cout = layer["pw"].shape[1]
    return pl.pallas_call(
        _make_sep_conv_bn_kernel(apply_relu, H, W, layer["pw"].dtype),
        out_shape=jax.ShapeDtypeStruct((N, H, W, Cout), jnp.float32),
        grid=(N,),
        in_specs=[
            pl.BlockSpec((1, H, W, Cin), lambda n: (n, 0, 0, 0)),
            pl.BlockSpec((3, 3, Cin), lambda n: (0, 0, 0)),
            pl.BlockSpec((Cin, Cout), lambda n: (0, 0)),
            pl.BlockSpec((1, Cout), lambda n: (0, 0)),
        ],
        out_specs=pl.BlockSpec((1, H, W, Cout), lambda n: (n, 0, 0, 0)),
        scratch_shapes=[pltpu.VMEM((H + 2, W + 2, Cin), jnp.float32)],
        compiler_params=pltpu.CompilerParams(
            dimension_semantics=("parallel",),
            vmem_limit_bytes=_VMEM_LIMIT),
    )(x, layer["dw"], layer["pw"], layer["shift"])


def _make_tail_kernel(apply_relu, has_skip, stride, H, W, Hout, Wout, Cout,
                      mxu_dtype):
    """Last layer fused: (relu)|dw3x3|pw1x1|+shift, skip 1x1+BN, 3x3/s max-pool,
    and the residual add, all in one kernel (no strided Ref indexing)."""
    def kernel(*refs):
        if has_skip:
            (h_ref, dw_ref, pw_ref, shift_ref,
             xs_ref, skw_ref, sksh_ref, out_ref, *scratch) = refs
        else:
            (h_ref, dw_ref, pw_ref, shift_ref,
             r_ref, out_ref, *scratch) = refs
        xpad_scr = scratch[0]

        # ---- main branch: (relu) -> depthwise 3x3 -> pointwise 1x1 -> +shift
        y = _sep_conv_bn_body(h_ref[0], xpad_scr, dw_ref, pw_ref, shift_ref,
                              H, W, apply_relu, mxu_dtype)      # (H, W, Cout)

        # ---- residual branch (skip 1x1 conv + BN; input already subsampled)
        if has_skip:
            xs = xs_ref[0]                                       # (Hout, Wout, Cin0)
            cin0 = xs.shape[-1]
            r = jnp.dot(xs.reshape(Hout * Wout, cin0).astype(skw_ref.dtype),
                        skw_ref[...], preferred_element_type=jnp.float32)
            r = (r + sksh_ref[...]).reshape(Hout, Wout, Cout)
        else:
            r = r_ref[0]                                         # identity (stride==1)

        # ---- (max-pool) + residual add, fused before the single output store
        if stride == 1:
            out_ref[0] = y + r
        else:
            ypad_scr = scratch[1]
            ypad_scr[...] = jnp.full(ypad_scr.shape, -jnp.inf, ypad_scr.dtype)
            ypad_scr[1:H + 1, 1:W + 1, :] = y                    # -inf MaxPool pad
            yp = ypad_scr[...]                                   # (H+2, W+2, Cout)
            # window-3 / stride-1 pooling via non-strided value slices, then
            # stride-s subsampling of the VALUE (not the Ref).
            r1 = jnp.maximum(jnp.maximum(yp[0:H], yp[1:H + 1]), yp[2:H + 2])
            r1 = r1[::stride]                                    # (Hout, W+2, Cout)
            c1 = jnp.maximum(jnp.maximum(r1[:, 0:W], r1[:, 1:W + 1]),
                             r1[:, 2:W + 2])
            m = c1[:, ::stride, :]                               # (Hout, Wout, Cout)
            out_ref[0] = m + r
    return kernel


def sep_conv_bn_tail(h, layer, *, x_or_resid, skip, stride, apply_relu):
    N, H, W, Cin = h.shape
    Cout = layer["pw"].shape[1]
    Hout = (H + 2 - 3) // stride + 1
    Wout = (W + 2 - 3) // stride + 1
    has_skip = skip is not None

    inputs = [h, layer["dw"], layer["pw"], layer["shift"]]
    in_specs = [
        pl.BlockSpec((1, H, W, Cin), lambda n: (n, 0, 0, 0)),
        pl.BlockSpec((3, 3, Cin), lambda n: (0, 0, 0)),
        pl.BlockSpec((Cin, Cout), lambda n: (0, 0)),
        pl.BlockSpec((1, Cout), lambda n: (0, 0)),
    ]
    if has_skip:
        # stride-s subsample done outside the kernel (plain XLA strided slice);
        # also shrinks the skip-input DMA by stride^2.
        xs = x_or_resid if stride == 1 else x_or_resid[:, ::stride, ::stride, :]
        Cin0 = xs.shape[-1]
        inputs += [xs, skip["w"], skip["shift"]]
        in_specs += [
            pl.BlockSpec((1, Hout, Wout, Cin0), lambda n: (n, 0, 0, 0)),
            pl.BlockSpec((Cin0, Cout), lambda n: (0, 0)),
            pl.BlockSpec((1, Cout), lambda n: (0, 0)),
        ]
    else:
        inputs += [x_or_resid]                           # (N, Hout, Wout, Cout)
        in_specs += [pl.BlockSpec((1, Hout, Wout, Cout), lambda n: (n, 0, 0, 0))]

    scratch = [pltpu.VMEM((H + 2, W + 2, Cin), jnp.float32)]
    if stride != 1:
        scratch.append(pltpu.VMEM((H + 2, W + 2, Cout), jnp.float32))

    return pl.pallas_call(
        _make_tail_kernel(apply_relu, has_skip, stride, H, W, Hout, Wout, Cout,
                          layer["pw"].dtype),
        out_shape=jax.ShapeDtypeStruct((N, Hout, Wout, Cout), jnp.float32),
        grid=(N,),
        in_specs=in_specs,
        out_specs=pl.BlockSpec((1, Hout, Wout, Cout), lambda n: (n, 0, 0, 0)),
        scratch_shapes=scratch,
        compiler_params=pltpu.CompilerParams(
            dimension_semantics=("parallel",),
            vmem_limit_bytes=_VMEM_LIMIT),
    )(*inputs)


# ------------------------------- _ConvBlock -------------------------------- #

def prepare_params(raw):
    """One-time parameter transform: fold BN scale into the pointwise weights
    and cast the MXU operands to bf16 (f32 shift kept)."""
    layers = []
    for L in raw["layers"]:
        pw = (L["pw"] * L["scale"][None, :]).astype(jnp.bfloat16)
        layers.append(dict(dw=L["dw"].astype(jnp.float32), pw=pw,
                           shift=L["shift"].reshape(1, -1).astype(jnp.float32)))
    skip = None
    if raw["skip"] is not None:
        S = raw["skip"]
        skip = dict(w=(S["w"] * S["scale"][None, :]).astype(jnp.bfloat16),
                    shift=S["shift"].reshape(1, -1).astype(jnp.float32))
    return dict(layers=layers, skip=skip)


def conv_block_forward(x_nchw, params, *, stride, relu_first=True):
    """Pallas-backed forward pass of _ConvBlock (NCHW in / NCHW out)."""
    x = jnp.transpose(x_nchw, (0, 2, 3, 1)).astype(jnp.float32)   # -> NHWC
    layers = params["layers"]
    skip = params["skip"]
    if skip is None and stride != 1:
        raise ValueError("identity residual requires stride == 1")

    h = x
    for idx, layer in enumerate(layers[:-1]):
        h = sep_conv_bn(h, layer, apply_relu=(relu_first or idx > 0))

    last_idx = len(layers) - 1
    out = sep_conv_bn_tail(h, layers[-1], x_or_resid=x, skip=skip,
                           stride=stride,
                           apply_relu=(relu_first or last_idx > 0))
    return jnp.transpose(out, (0, 3, 1, 2))                       # -> NCHW


# --------------------------- pure-JAX reference ----------------------------- #

def ref_forward(x_nchw, raw, *, stride, relu_first=True):
    x = jnp.transpose(x_nchw, (0, 2, 3, 1)).astype(jnp.float32)
    if raw["skip"] is not None:
        xs = x[:, ::stride, ::stride, :]
        resid = jnp.einsum("nhwc,co->nhwo", xs, raw["skip"]["w"])
        resid = resid * raw["skip"]["scale"] + raw["skip"]["shift"]
    else:
        resid = x
    h = x
    for idx, layer in enumerate(raw["layers"]):
        if relu_first or idx > 0:
            h = jnp.maximum(h, 0.0)
        dw_hwio = layer["dw"][:, :, None, :]                      # (3,3,1,C)
        h = jax.lax.conv_general_dilated(
            h, dw_hwio, window_strides=(1, 1), padding=((1, 1), (1, 1)),
            dimension_numbers=("NHWC", "HWIO", "NHWC"),
            feature_group_count=h.shape[-1])
        h = jnp.einsum("nhwc,co->nhwo", h, layer["pw"])
        h = h * layer["scale"] + layer["shift"]
    if stride != 1:
        h = jax.lax.reduce_window(
            h, -jnp.inf, jax.lax.max, (1, 3, 3, 1), (1, stride, stride, 1),
            padding=((0, 0), (1, 1), (1, 1), (0, 0)))
    return jnp.transpose(h + resid, (0, 3, 1, 2))


# ------------------------------- main / demo -------------------------------- #

def _bn_params(k, c):
    k1, k2, k3, k4 = jax.random.split(k, 4)
    gamma = 1.0 + 0.1 * jax.random.normal(k1, (c,), jnp.float32)
    beta = 0.1 * jax.random.normal(k2, (c,), jnp.float32)
    mean = 0.1 * jax.random.normal(k3, (c,), jnp.float32)
    var = jax.random.uniform(k4, (c,), jnp.float32, minval=0.5, maxval=1.5)
    scale = gamma / jnp.sqrt(var + 1e-5)
    shift = beta - mean * scale
    return scale, shift


def _make_raw_params(key, cin, cout, n_layers):
    ks = jax.random.split(key, n_layers + 1)
    layers = []
    c = cin
    for i in range(n_layers):
        kd, kp, kb = jax.random.split(ks[i], 3)
        dw = 0.2 * jax.random.normal(kd, (3, 3, c), jnp.float32)      # depthwise
        pw = 0.2 * jax.random.normal(kp, (c, cout), jnp.float32)      # pointwise
        scale, shift = _bn_params(kb, cout)
        layers.append(dict(dw=dw, pw=pw, scale=scale, shift=shift))
        c = cout
    skip = None
    if cin != cout:                                                   # skip conv
        kw, kb = jax.random.split(ks[-1], 2)
        w = 0.2 * jax.random.normal(kw, (cin, cout), jnp.float32)
        scale, shift = _bn_params(kb, cout)
        skip = dict(w=w, scale=scale, shift=shift)
    return dict(layers=layers, skip=skip)


if __name__ == "__main__":
    key = jax.random.PRNGKey(0)
    cases = [
        # (N, Cin, Cout, H, W, stride, n_layers)
        (2, 4, 8, 16, 16, 2, 2),   # skip 1x1/s2 conv + 3x3/s2 max-pool
        (2, 8, 8, 16, 16, 1, 2),   # identity residual, no pooling
        (2, 4, 8, 16, 16, 1, 2),   # skip 1x1/s1 conv, no pooling
    ]
    for ci, (N, Cin, Cout, H, W, stride, n_layers) in enumerate(cases):
        kx, kp, key = jax.random.split(key, 3)
        x_nchw = jax.random.normal(kx, (N, Cin, H, W), jnp.float32)
        raw = _make_raw_params(kp, Cin, Cout, n_layers)
        params = prepare_params(raw)

        out = conv_block_forward(x_nchw, params, stride=stride)
        out = jax.block_until_ready(out)

        Hout = (H + 2 - 3) // stride + 1
        Wout = (W + 2 - 3) // stride + 1
        assert out.shape == (N, Cout, Hout, Wout), (ci, out.shape)

        ref = ref_forward(x_nchw, raw, stride=stride)
        # bf16 MXU operands -> slightly looser tolerance than a pure-f32 path.
        if not jnp.allclose(out, ref, atol=5e-2, rtol=5e-2):
            err = float(jnp.max(jnp.abs(out - ref)))
            raise SystemExit(f"case {ci}: mismatch vs reference, max abs err {err}")
    print("KERNEL_OK")
</pallas_src>

<mosaic_0001>
module attributes {stable_mosaic.version = 11 : i64} {
  func.func @kernel(%arg0: i32, %arg1: memref<1x16x16x4xf32, #tpu.memory_space<vmem>>, %arg2: memref<3x3x4xf32, #tpu.memory_space<vmem>>, %arg3: memref<4x8xbf16, #tpu.memory_space<vmem>>, %arg4: memref<1x8xf32, #tpu.memory_space<vmem>>, %arg5: memref<1x16x16x8xf32, #tpu.memory_space<vmem>>, %arg6: memref<18x18x4xf32, #tpu.memory_space<vmem>>) attributes {dimension_semantics = [#tpu.dimension_semantics<parallel>], iteration_bounds = array<i64: 2>, scalar_prefetch = 0 : i64, scratch_operands = 1 : i64, tpu.core_type = #tpu.core_type<tc>, window_params = [{transform_indices = @transform_0, window_bounds = array<i64: 1, 16, 16, 4>}, {pipeline_mode = #tpu.pipeline_mode<synchronous>, transform_indices = @transform_1, window_bounds = array<i64: 3, 3, 4>}, {pipeline_mode = #tpu.pipeline_mode<synchronous>, transform_indices = @transform_2, window_bounds = array<i64: 4, 8>}, {pipeline_mode = #tpu.pipeline_mode<synchronous>, transform_indices = @transform_3, window_bounds = array<i64: 1, 8>}, {transform_indices = @transform_4, window_bounds = array<i64: 1, 16, 16, 8>}]} {
    %c0 = arith.constant 0 : index
    %c0_0 = arith.constant 0 : index
    %c0_1 = arith.constant 0 : index
    %c0_2 = arith.constant 0 : index
    %0 = vector.load %arg1[%c0, %c0_0, %c0_1, %c0_2] : memref<1x16x16x4xf32, #tpu.memory_space<vmem>>, vector<1x16x16x4xf32>
    %1 = vector.shape_cast %0 : vector<1x16x16x4xf32> to vector<16x16x4xf32>
    %cst = arith.constant 0.000000e+00 : f32
    %2 = vector.broadcast %cst : f32 to vector<16x16x4xf32>
    %3 = arith.maximumf %1, %2 : vector<16x16x4xf32>
    %cst_3 = arith.constant 0.000000e+00 : f32
    %4 = vector.broadcast %cst_3 : f32 to vector<18x18x4xf32>
    %c0_4 = arith.constant 0 : index
    %c0_5 = arith.constant 0 : index
    %c0_6 = arith.constant 0 : index
    %5 = vector.load %arg6[%c0_4, %c0_5, %c0_6] : memref<18x18x4xf32, #tpu.memory_space<vmem>>, vector<18x18x4xf32>
    tpu.vector_store %arg6[%c0_4, %c0_5, %c0_6], %4 {strides = array<i32>} : memref<18x18x4xf32, #tpu.memory_space<vmem>>, vector<18x18x4xf32>,
    %c1 = arith.constant 1 : index
    %c1_7 = arith.constant 1 : index
    %c0_8 = arith.constant 0 : index
    %6 = vector.load %arg6[%c1, %c1_7, %c0_8] : memref<18x18x4xf32, #tpu.memory_space<vmem>>, vector<16x16x4xf32>
    tpu.vector_store %arg6[%c1, %c1_7, %c0_8], %3 {strides = array<i32>} : memref<18x18x4xf32, #tpu.memory_space<vmem>>, vector<16x16x4xf32>,
    %c0_9 = arith.constant 0 : index
    %c0_10 = arith.constant 0 : index
    %c0_11 = arith.constant 0 : index
    %7 = vector.load %arg6[%c0_9, %c0_10, %c0_11] : memref<18x18x4xf32, #tpu.memory_space<vmem>>, vector<18x18x4xf32>
    %c0_12 = arith.constant 0 : index
    %c0_13 = arith.constant 0 : index
    %c0_14 = arith.constant 0 : index
    %8 = vector.load %arg2[%c0_12, %c0_13, %c0_14] : memref<3x3x4xf32, #tpu.memory_space<vmem>>, vector<3x3x4xf32>
    %cst_15 = arith.constant 0.000000e+00 : f32
    %9 = vector.broadcast %cst_15 : f32 to vector<16x16x4xf32>
    %10 = vector.extract_strided_slice %7 {offsets = [0, 0, 0], sizes = [16, 16, 4], strides = [1, 1, 1]} : vector<18x18x4xf32> to vector<16x16x4xf32>
    %11 = vector.extract_strided_slice %8 {offsets = [0, 0, 0], sizes = [1, 1, 4], strides = [1, 1, 1]} : vector<3x3x4xf32> to vector<1x1x4xf32>
    %12 = vector.shape_cast %11 : vector<1x1x4xf32> to vector<4xf32>
    %13 = vector.shape_cast %12 : vector<4xf32> to vector<1x1x4xf32>
    %14 = vector.broadcast %13 : vector<1x1x4xf32> to vector<16x16x4xf32>
    %15 = arith.mulf %10, %14 : vector<16x16x4xf32>
    %16 = arith.addf %9, %15 : vector<16x16x4xf32>
    %17 = vector.extract_strided_slice %7 {offsets = [0, 1, 0], sizes = [16, 16, 4], strides = [1, 1, 1]} : vector<18x18x4xf32> to vector<16x16x4xf32>
    %18 = vector.extract_strided_slice %8 {offsets = [0, 1, 0], sizes = [1, 1, 4], strides = [1, 1, 1]} : vector<3x3x4xf32> to vector<1x1x4xf32>
    %19 = vector.shape_cast %18 : vector<1x1x4xf32> to vector<4xf32>
    %20 = vector.shape_cast %19 : vector<4xf32> to vector<1x1x4xf32>
    %21 = vector.broadcast %20 : vector<1x1x4xf32> to vector<16x16x4xf32>
    %22 = arith.mulf %17, %21 : vector<16x16x4xf32>
    %23 = arith.addf %16, %22 : vector<16x16x4xf32>
    %24 = vector.extract_strided_slice %7 {offsets = [0, 2, 0], sizes = [16, 16, 4], strides = [1, 1, 1]} : vector<18x18x4xf32> to vector<16x16x4xf32>
    %25 = vector.extract_strided_slice %8 {offsets = [0, 2, 0], sizes = [1, 1, 4], strides = [1, 1, 1]} : vector<3x3x4xf32> to vector<1x1x4xf32>
    %26 = vector.shape_cast %25 : vector<1x1x4xf32> to vector<4xf32>
    %27 = vector.shape_cast %26 : vector<4xf32> to vector<1x1x4xf32>
    %28 = vector.broadcast %27 : vector<1x1x4xf32> to vector<16x16x4xf32>
    %29 = arith.mulf %24, %28 : vector<16x16x4xf32>
    %30 = arith.addf %23, %29 : vector<16x16x4xf32>
    %31 = vector.extract_strided_slice %7 {offsets = [1, 0, 0], sizes = [16, 16, 4], strides = [1, 1, 1]} : vector<18x18x4xf32> to vector<16x16x4xf32>
    %32 = vector.extract_strided_slice %8 {offsets = [1, 0, 0], sizes = [1, 1, 4], strides = [1, 1, 1]} : vector<3x3x4xf32> to vector<1x1x4xf32>
    %33 = vector.shape_cast %32 : vector<1x1x4xf32> to vector<4xf32>
    %34 = vector.shape_cast %33 : vector<4xf32> to vector<1x1x4xf32>
    %35 = vector.broadcast %34 : vector<1x1x4xf32> to vector<16x16x4xf32>
    %36 = arith.mulf %31, %35 : vector<16x16x4xf32>
    %37 = arith.addf %30, %36 : vector<16x16x4xf32>
    %38 = vector.extract_strided_slice %7 {offsets = [1, 1, 0], sizes = [16, 16, 4], strides = [1, 1, 1]} : vector<18x18x4xf32> to vector<16x16x4xf32>
    %39 = vector.extract_strided_slice %8 {offsets = [1, 1, 0], sizes = [1, 1, 4], strides = [1, 1, 1]} : vector<3x3x4xf32> to vector<1x1x4xf32>
    %40 = vector.shape_cast %39 : vector<1x1x4xf32> to vector<4xf32>
    %41 = vector.shape_cast %40 : vector<4xf32> to vector<1x1x4xf32>
    %42 = vector.broadcast %41 : vector<1x1x4xf32> to vector<16x16x4xf32>
    %43 = arith.mulf %38, %42 : vector<16x16x4xf32>
    %44 = arith.addf %37, %43 : vector<16x16x4xf32>
    %45 = vector.extract_strided_slice %7 {offsets = [1, 2, 0], sizes = [16, 16, 4], strides = [1, 1, 1]} : vector<18x18x4xf32> to vector<16x16x4xf32>
    %46 = vector.extract_strided_slice %8 {offsets = [1, 2, 0], sizes = [1, 1, 4], strides = [1, 1, 1]} : vector<3x3x4xf32> to vector<1x1x4xf32>
    %47 = vector.shape_cast %46 : vector<1x1x4xf32> to vector<4xf32>
    %48 = vector.shape_cast %47 : vector<4xf32> to vector<1x1x4xf32>
    %49 = vector.broadcast %48 : vector<1x1x4xf32> to vector<16x16x4xf32>
    %50 = arith.mulf %45, %49 : vector<16x16x4xf32>
    %51 = arith.addf %44, %50 : vector<16x16x4xf32>
    %52 = vector.extract_strided_slice %7 {offsets = [2, 0, 0], sizes = [16, 16, 4], strides = [1, 1, 1]} : vector<18x18x4xf32> to vector<16x16x4xf32>
    %53 = vector.extract_strided_slice %8 {offsets = [2, 0, 0], sizes = [1, 1, 4], strides = [1, 1, 1]} : vector<3x3x4xf32> to vector<1x1x4xf32>
    %54 = vector.shape_cast %53 : vector<1x1x4xf32> to vector<4xf32>
    %55 = vector.shape_cast %54 : vector<4xf32> to vector<1x1x4xf32>
    %56 = vector.broadcast %55 : vector<1x1x4xf32> to vector<16x16x4xf32>
    %57 = arith.mulf %52, %56 : vector<16x16x4xf32>
    %58 = arith.addf %51, %57 : vector<16x16x4xf32>
    %59 = vector.extract_strided_slice %7 {offsets = [2, 1, 0], sizes = [16, 16, 4], strides = [1, 1, 1]} : vector<18x18x4xf32> to vector<16x16x4xf32>
    %60 = vector.extract_strided_slice %8 {offsets = [2, 1, 0], sizes = [1, 1, 4], strides = [1, 1, 1]} : vector<3x3x4xf32> to vector<1x1x4xf32>
    %61 = vector.shape_cast %60 : vector<1x1x4xf32> to vector<4xf32>
    %62 = vector.shape_cast %61 : vector<4xf32> to vector<1x1x4xf32>
    %63 = vector.broadcast %62 : vector<1x1x4xf32> to vector<16x16x4xf32>
    %64 = arith.mulf %59, %63 : vector<16x16x4xf32>
    %65 = arith.addf %58, %64 : vector<16x16x4xf32>
    %66 = vector.extract_strided_slice %7 {offsets = [2, 2, 0], sizes = [16, 16, 4], strides = [1, 1, 1]} : vector<18x18x4xf32> to vector<16x16x4xf32>
    %67 = vector.extract_strided_slice %8 {offsets = [2, 2, 0], sizes = [1, 1, 4], strides = [1, 1, 1]} : vector<3x3x4xf32> to vector<1x1x4xf32>
    %68 = vector.shape_cast %67 : vector<1x1x4xf32> to vector<4xf32>
    %69 = vector.shape_cast %68 : vector<4xf32> to vector<1x1x4xf32>
    %70 = vector.broadcast %69 : vector<1x1x4xf32> to vector<16x16x4xf32>
    %71 = arith.mulf %66, %70 : vector<16x16x4xf32>
    %72 = arith.addf %65, %71 : vector<16x16x4xf32>
    %73 = vector.shape_cast %72 : vector<16x16x4xf32> to vector<256x4xf32>
    %74 = arith.truncf %73 : vector<256x4xf32> to vector<256x4xbf16>
    %c0_16 = arith.constant 0 : index
    %c0_17 = arith.constant 0 : index
    %75 = vector.load %arg3[%c0_16, %c0_17] : memref<4x8xbf16, #tpu.memory_space<vmem>>, vector<4x8xbf16>
    %cst_18 = arith.constant dense<0.000000e+00> : vector<256x8xf32>
    %76 = tpu.matmul %74, %75, %cst_18 {dimension_numbers = #tpu.dot_dimension_numbers<[1], [0], [0], [1], [0, 0, 1, 1], [], []>} : vector<256x4xbf16>, vector<4x8xbf16>, vector<256x8xf32> -> vector<256x8xf32>
    %c0_19 = arith.constant 0 : index
    %c0_20 = arith.constant 0 : index
    %77 = vector.load %arg4[%c0_19, %c0_20] : memref<1x8xf32, #tpu.memory_space<vmem>>, vector<1x8xf32>
    %78 = vector.broadcast %77 : vector<1x8xf32> to vector<256x8xf32>
    %79 = arith.addf %76, %78 : vector<256x8xf32>
    %80 = vector.shape_cast %79 : vector<256x8xf32> to vector<16x16x8xf32>
    %c0_21 = arith.constant 0 : index
    %c0_22 = arith.constant 0 : index
    %c0_23 = arith.constant 0 : index
    %c0_24 = arith.constant 0 : index
    %81 = vector.load %arg5[%c0_21, %c0_22, %c0_23, %c0_24] : memref<1x16x16x8xf32, #tpu.memory_space<vmem>>, vector<1x16x16x8xf32>
    %82 = vector.shape_cast %81 : vector<1x16x16x8xf32> to vector<16x16x8xf32>
    %83 = vector.shape_cast %80 : vector<16x16x8xf32> to vector<1x16x16x8xf32>
    tpu.vector_store %arg5[%c0_21, %c0_22, %c0_23, %c0_24], %83 {strides = array<i32>} : memref<1x16x16x8xf32, #tpu.memory_space<vmem>>, vector<1x16x16x8xf32>,
    return
  }
  func.func @transform_0(%arg0: i32) -> (i32, i32, i32, i32) {
    %c0_i32 = arith.constant 0 : i32
    %c0_i32_0 = arith.constant 0 : i32
    %c0_i32_1 = arith.constant 0 : i32
    %c0_i32_2 = arith.constant 0 : i32
    return %arg0, %c0_i32, %c0_i32_0, %c0_i32_1 : i32, i32, i32, i32
  }
  func.func @transform_1(%arg0: i32) -> (i32, i32, i32) {
    %c0_i32 = arith.constant 0 : i32
    %c0_i32_0 = arith.constant 0 : i32
    %c0_i32_1 = arith.constant 0 : i32
    %c0_i32_2 = arith.constant 0 : i32
    return %c0_i32, %c0_i32_0, %c0_i32_1 : i32, i32, i32
  }
  func.func @transform_2(%arg0: i32) -> (i32, i32) {
    %c0_i32 = arith.constant 0 : i32
    %c0_i32_0 = arith.constant 0 : i32
    %c0_i32_1 = arith.constant 0 : i32
    return %c0_i32, %c0_i32_0 : i32, i32
  }
  func.func @transform_3(%arg0: i32) -> (i32, i32) {
    %c0_i32 = arith.constant 0 : i32
    %c0_i32_0 = arith.constant 0 : i32
    %c0_i32_1 = arith.constant 0 : i32
    return %c0_i32, %c0_i32_0 : i32, i32
  }
  func.func @transform_4(%arg0: i32) -> (i32, i32, i32, i32) {
    %c0_i32 = arith.constant 0 : i32
    %c0_i32_0 = arith.constant 0 : i32
    %c0_i32_1 = arith.constant 0 : i32
    %c0_i32_2 = arith.constant 0 : i32
    return %arg0, %c0_i32, %c0_i32_0, %c0_i32_1 : i32, i32, i32, i32
  }
}

</mosaic_0001>

<bundles_post_ra>
// kernel: tpu_custom_call.1
= control target key start
LH: loop header
LB: loop body
LE: loop exit
PB: predicated region body
PF: predicated region fallthrough
CT: control target
= control target key end

     0   :  { %s2538_s15 = smov 0   ;;  %s3895_s0 = inlined_call_operand.vmem [shape: f32[2,16,16,4], index: 0, kind: input, shape index: {}]   ;;  %s3896_s1 = inlined_call_operand.vmem [shape: f32[3,3,4], index: 1, kind: input, shape index: {}]   ;;  %s3897_s2 = inlined_call_operand.vmem [shape: bf16[4,8], index: 2, kind: input, shape index: {}]   ;;  %s3898_s3 = inlined_call_operand.vmem [shape: f32[1,8], index: 3, kind: input, shape index: {}]   ;;  %s3899_s4 = inlined_call_operand.vmem [shape: f32[2,16,16,8], index: 4, kind: output, shape index: {}]  }
   0x1 LB: > { %s2404_s16 = sadd.s32 4294967295, %s2510_s15   ;;  %p2408_p0 = scmp.ge.s32.totalorder %s2510_s15, 1  ;;  %s2510_s15 = sphi %s2538_s15, %s14_s15  }
   0x2   : > { %p162_p1 = scmp.lt.s32.totalorder %s2510_s15, 3 }
   0x4   : > { %p163_p2 = pnand %p2408_p0, %p162_p1 }
   0x5   : > { %v2095_v0 = vld [vmem:[%s3897_s2] sm:$0x3] (!%p163_p2)  ;;  %vm2151_vm0 = vcmask (!%p163_p2), 1041408   ;;  %p2551_p3 = scmp.lt.s32.totalorder (!%p163_p2), %s2404_s16, 1  ;;  %vm263_vm1 = vcmask (!%p163_p2), 31744   ;;  %v409_v1 = vlaneseq (!%p163_p2)  ;;  %v2512_v3 = vmov (!%p163_p2), 0.0  }
   0x6   : > { %166 = sbr.rel (%p163_p2) target bundleno = 548 (0x224), region = 36  ;;  %2487 = vmatprep.subr.msk.bf16.mxu0 (!%p163_p2), %vm2151_vm0, %v2095_v0  ;;  %2488 = vmatprep.subr.msk.bf16.mxu1 (!%p163_p2), %vm2151_vm0, %v2095_v0  ;;  %v2153_v2 = vsel (!%p163_p2), %vm2151_vm0, %v2095_v0, 0  ;;  %264 = vst.msk [vmem:[#allocation2] sm:$0xff] (!%p163_p2), %vm263_vm1, %v2512_v3  ;;  %265 = vst.msk [vmem:[#allocation2 + $0x8] sm:$0xff] (!%p163_p2), %vm263_vm1, %v2512_v3  ;;  %vm266_vm2 = vcmask (!%p163_p2), 25600   ;;  %vm577_vm3 = vcmask (!%p163_p2), 1046528  }
   0x7   : > { %268 = vst.msk [vmem:[#allocation2 + $0x18] sm:$0xff] (!%p163_p2), %vm263_vm1, %v2512_v3  ;;  %269 = vst.msk [vmem:[#allocation2 + $0x20] sm:$0xff] (!%p163_p2), %vm263_vm1, %v2512_v3  ;;  %2452 = vmatpush3.bf16.msra.mxu0 (!%p163_p2), %v2153_v2  ;;  %2486 = vmatpush3.bf16.msra.mxu1 (!%p163_p2), %v2153_v2  ;;  %v410_v4 = vshrl.u32 (!%p163_p2), %v409_v1, 7  ;;  %v406_v5 = vld [vmem:[%s3896_s1] sm:$0x7] (!%p163_p2)  ;;  %vm822_vm4 = vcmask (!%p163_p2), 1045504  }
   0x8   : > { %271 = vst.msk [vmem:[#allocation2 + $0x30] sm:$0xff] (!%p163_p2), %vm263_vm1, %v2512_v3  ;;  %272 = vst.msk [vmem:[#allocation2 + $0x38] sm:$0xff] (!%p163_p2), %vm263_vm1, %v2512_v3  ;;  %v407_v6 = vld [vmem:[%s3896_s1 + $0x4] sm:$0x7] (!%p163_p2)  ;;  %v2634_v10 = vld [vmem:[%s3896_s1 + $0x8] sm:$0x7] (!%p163_p2) }
   0x9   : > { %274 = vst.msk [vmem:[#allocation2 + $0x48] sm:$0xff] (!%p163_p2), %vm263_vm1, %v2512_v3  ;;  %275 = vst.msk [vmem:[#allocation2 + $0x50] sm:$0xff] (!%p163_p2), %vm263_vm1, %v2512_v3  ;;  %v411_v7 = vsub.s32 (!%p163_p2), 0, %v410_v4  ;;  %v479_v8 = vsub.s32 (!%p163_p2), 1, %v410_v4  ;;  %v2622_v9 = vsub.s32 (!%p163_p2), 2, %v410_v4  ;;  %vm2316_vm5 = vcmask (!%p163_p2), 64512  }
   0xa   : > { %277 = vst.msk [vmem:[#allocation2 + $0x60] sm:$0xff] (!%p163_p2), %vm263_vm1, %v2512_v3  ;;  %278 = vst.msk [vmem:[#allocation2 + $0x68] sm:$0xff] (!%p163_p2), %vm263_vm1, %v2512_v3 }
   0xb   : > { %280 = vst.msk [vmem:[#allocation2 + $0x78] sm:$0xff] (!%p163_p2), %vm263_vm1, %v2512_v3  ;;  %281 = vst.msk [vmem:[#allocation2 + $0x80] sm:$0xff] (!%p163_p2), %vm263_vm1, %v2512_v3  ;;  %v2639_v14 = vrot.slane (!%p163_p2), %v406_v5, %v411_v7  ;;  %v2641_v15 = vrot.slane (!%p163_p2), %v406_v5, %v479_v8  ;;  %v2644_v16 = vrot.slane (!%p163_p2), %v406_v5, %v2622_v9 }
   0xc   : > { %283 = vst.msk [vmem:[#allocation2 + $0x90] sm:$0xff] (!%p163_p2), %vm263_vm1, %v2512_v3  ;;  %284 = vst.msk [vmem:[#allocation2 + $0x98] sm:$0xff] (!%p163_p2), %vm263_vm1, %v2512_v3  ;;  %v2647_v21 = vrot.slane (!%p163_p2), %v407_v6, %v411_v7  ;;  %v2649_v25 = vrot.slane (!%p163_p2), %v407_v6, %v479_v8  ;;  %v2652_v26 = vrot.slane (!%p163_p2), %v407_v6, %v2622_v9 }
   0xd   : > { %286 = vst.msk [vmem:[#allocation2 + $0xa8] sm:$0xff] %vm263_vm1, %v2512_v3  ;;  %287 = vst.msk [vmem:[#allocation2 + $0xb0] sm:$0xff] %vm263_vm1, %v2512_v3  ;;  %s3902_s16 = smov (!%p2551_p3, %s2404_s16), 1  ;;  %v352_v23 = vld [vmem:[#allocation2] sm:$0xff]  ;;  %v353_v24 = vld [vmem:[#allocation2 + $0x8] sm:$0xff]  ;;  %v2655_v27 = vrot.slane %v2634_v10, %v411_v7  ;;  %v2665_v33 = vrot.slane %v2634_v10, %v479_v8  ;;  %v2693_v5 = vrot.slane %v2634_v10, %v2622_v9 }
   0xe   : > { %289 = vst.msk [vmem:[#allocation2 + $0xc0] sm:$0xff] %vm263_vm1, %v2512_v3  ;;  %290 = vst.msk [vmem:[#allocation2 + $0xc8] sm:$0xff] %vm263_vm1, %v2512_v3  ;;  %s2432_s22 = sshll.u32 %s3902_s16, 8  ;;  %v413_v30 = vmul.f32 %v2639_v14, %v352_v23  ;;  %v481_v31 = vmul.f32 %v2641_v15, %v352_v23  ;;  %v482_v32 = vmul.f32 %v2641_v15, %v353_v24 }
   0xf   : > { %292 = vst.msk [vmem:[#allocation2 + $0xd8] sm:$0xff] %vm263_vm1, %v2512_v3  ;;  %293 = vst.msk [vmem:[#allocation2 + $0xe0] sm:$0xff] %vm263_vm1, %v2512_v3  ;;  %s2629_s27 = scalar_lea.vmem %s3895_s0, %s2432_s22  ;;  %v726_v35 = vmul.f32 %v2644_v16, %v352_v23  ;;  %v727_v36 = vmul.f32 %v2644_v16, %v353_v24  ;;  %v414_v41 = vmul.f32 %v2639_v14, %v353_v24  ;;  %s3786_s8 = scalar_lea.vmem %s3899_s4, %s2432_s22 }
  0x10   : > { %295 = vst.msk [vmem:[#allocation2 + $0xf0] sm:$0xff] %vm263_vm1, %v2512_v3  ;;  %296 = vst.msk [vmem:[#allocation2 + $0xf8] sm:$0xff] %vm263_vm1, %v2512_v3  ;;  %v199_v11 = vld [vmem:[%s2629_s27] sm:$0xff]  ;;  %v200_v12 = vld [vmem:[%s2629_s27 + $0x8] sm:$0xff]  ;;  %v578_v42 = vrot.slane %v481_v31, 1  ;;  %v579_v43 = vrot.slane %v482_v32, 1 }
  0x11   : > { %298 = vst.msk [vmem:[#allocation2 + $0x108] sm:$0xff] %vm263_vm1, %v2512_v3  ;;  %299 = vst.msk [vmem:[#allocation2 + $0x110] sm:$0xff] %vm263_vm1, %v2512_v3  ;;  %v201_v13 = vld [vmem:[%s2629_s27 + $0x10] sm:$0xff]  ;;  %v202_v17 = vld [vmem:[%s2629_s27 + $0x18] sm:$0xff]  ;;  %v231_v18 = vmax.f32 %v199_v11, 0.0  ;;  %v232_v19 = vmax.f32 %v200_v12, 0.0 }
  0x12   : > { %301 = vst.msk [vmem:[#allocation2 + $0x120] sm:$0xff] %vm263_vm1, %v2512_v3  ;;  %302 = vst.msk [vmem:[#allocation2 + $0x128] sm:$0xff] %vm263_vm1, %v2512_v3  ;;  %v233_v20 = vmax.f32 %v201_v13, 0.0  ;;  %v234_v22 = vmax.f32 %v202_v17, 0.0  ;;  %v203_v28 = vld [vmem:[%s2629_s27 + $0x20] sm:$0xff]  ;;  %v204_v38 = vld [vmem:[%s2629_s27 + $0x28] sm:$0xff]  ;;  %v580_v52 = vsel %vm577_vm3, %v578_v42, %v579_v43 }
  0x13   : > { %304 = vst.msk [vmem:[#allocation2 + $0x138] sm:$0xff] %vm263_vm1, %v2512_v3  ;;  %305 = vst.msk [vmem:[#allocation2 + $0x140] sm:$0xff] %vm263_vm1, %v2512_v3  ;;  %v213_v39 = vld [vmem:[%s2629_s27 + $0x70] sm:$0xff]  ;;  %v214_v40 = vld [vmem:[%s2629_s27 + $0x78] sm:$0xff]  ;;  %v235_v44 = vmax.f32 %v203_v28, 0.0  ;;  %v823_v47 = vrot.slane %v726_v35, 2  ;;  %v690_v59 = vadd.f32 %v580_v52, %v413_v30 }
  0x14   : > { %307 = vst.msk [vmem:[#allocation2 + $0x150] sm:$0xff] %vm263_vm1, %v2512_v3  ;;  %308 = vst.msk [vmem:[#allocation2 + $0x158] sm:$0xff] %vm263_vm1, %v2512_v3  ;;  %v215_v45 = vld [vmem:[%s2629_s27 + $0x80] sm:$0xff]  ;;  %v824_v48 = vrot.slane %v727_v36, 2  ;;  %v216_v50 = vld [vmem:[%s2629_s27 + $0x88] sm:$0xff]  ;;  %v236_v53 = vmax.f32 %v204_v38, 0.0 }
  0x15   : > { %310 = vst.msk [vmem:[#allocation2 + $0x168] sm:$0xff] %vm263_vm1, %v2512_v3  ;;  %311 = vst.msk [vmem:[#allocation2 + $0x170] sm:$0xff] %vm263_vm1, %v2512_v3  ;;  %v217_v51 = vld [vmem:[%s2629_s27 + $0x90] sm:$0xff]  ;;  %v218_v54 = vld [vmem:[%s2629_s27 + $0x98] sm:$0xff]  ;;  %v245_v55 = vmax.f32 %v213_v39, 0.0  ;;  %v246_v56 = vmax.f32 %v214_v40, 0.0 }
  0x16   : > { %313 = vst.msk [vmem:[#allocation2 + $0x180] sm:$0xff] %vm263_vm1, %v2512_v3  ;;  %314 = vst.msk [vmem:[#allocation2 + $0x188] sm:$0xff] %vm263_vm1, %v2512_v3  ;;  %v219_v57 = vld [vmem:[%s2629_s27 + $0xa0] sm:$0xff]  ;;  %v825_v60 = vsel %vm822_vm4, %v823_v47, %v824_v48  ;;  %v247_v63 = vmax.f32 %v215_v45, 0.0  ;;  %v248_v0 = vmax.f32 %v216_v50, 0.0  ;;  %v249_v1 = vmax.f32 %v217_v51, 0.0 }
  0x17   : > { %316 = vst.msk [vmem:[#allocation2 + $0x198] sm:$0xff] %vm263_vm1, %v2512_v3  ;;  %317 = vst.msk [vmem:[#allocation2 + $0x1a0] sm:$0xff] %vm263_vm1, %v2512_v3  ;;  %v935_v4 = vadd.f32 %v825_v60, %v690_v59  ;;  %v250_v6 = vmax.f32 %v218_v54, 0.0  ;;  %v251_v7 = vmax.f32 %v219_v57, 0.0 }
  0x18   : > { %267 = vst.msk [vmem:[#allocation2 + $0x10] sm:$0x3] %vm266_vm2, %v2512_v3  ;;  %270 = vst.msk [vmem:[#allocation2 + $0x28] sm:$0x3] %vm266_vm2, %v2512_v3 }
  0x19   : > { %273 = vst.msk [vmem:[#allocation2 + $0x40] sm:$0x3] %vm266_vm2, %v2512_v3  ;;  %276 = vst.msk [vmem:[#allocation2 + $0x58] sm:$0x3] %vm266_vm2, %v2512_v3 }
  0x1a   : > { %279 = vst.msk [vmem:[#allocation2 + $0x70] sm:$0x3] %vm266_vm2, %v2512_v3  ;;  %282 = vst.msk [vmem:[#allocation2 + $0x88] sm:$0x3] %vm266_vm2, %v2512_v3 }
  0x1b   : > { %285 = vst.msk [vmem:[#allocation2 + $0xa0] sm:$0x3] %vm266_vm2, %v2512_v3  ;;  %288 = vst.msk [vmem:[#allocation2 + $0xb8] sm:$0x3] %vm266_vm2, %v2512_v3 }
  0x1c   : > { %291 = vst.msk [vmem:[#allocation2 + $0xd0] sm:$0x3] %vm266_vm2, %v2512_v3  ;;  %294 = vst.msk [vmem:[#allocation2 + $0xe8] sm:$0x3] %vm266_vm2, %v2512_v3 }
  0x1d   : > { %297 = vst.msk [vmem:[#allocation2 + $0x100] sm:$0x3] %vm266_vm2, %v2512_v3  ;;  %300 = vst.msk [vmem:[#allocation2 + $0x118] sm:$0x3] %vm266_vm2, %v2512_v3 }
  0x1e   : > { %303 = vst.msk [vmem:[#allocation2 + $0x130] sm:$0x3] %vm266_vm2, %v2512_v3  ;;  %306 = vst.msk [vmem:[#allocation2 + $0x148] sm:$0x3] %vm266_vm2, %v2512_v3 }
  0x1f   : > { %309 = vst.msk [vmem:[#allocation2 + $0x160] sm:$0x3] %vm266_vm2, %v2512_v3  ;;  %312 = vst.msk [vmem:[#allocation2 + $0x178] sm:$0x3] %vm266_vm2, %v2512_v3  ;;  %v354_v29 = vld [vmem:[#allocation2 + $0x10] sm:$0x3] }
  0x20   : > { %315 = vst.msk [vmem:[#allocation2 + $0x190] sm:$0x3] %vm266_vm2, %v2512_v3  ;;  %318 = vst.msk [vmem:[#allocation2 + $0x1a8] sm:$0x3] %vm266_vm2, %v2512_v3  ;;  %v483_v34 = vmul.f32 %v2641_v15, %v354_v29  ;;  %v728_v37 = vmul.f32 %v2644_v16, %v354_v29 }
  0x21   : > { %320 = vst.msk [vmem:[#allocation2 + $0x19] sm:$0xff] %vm263_vm1, %v231_v18  ;;  %321 = vst.msk [vmem:[#allocation2 + $0x21] sm:$0xff] %vm263_vm1, %v232_v19 }
  0x22   : > { %322 = vst.msk [vmem:[#allocation2 + $0x31] sm:$0xff] %vm263_vm1, %v233_v20  ;;  %323 = vst.msk [vmem:[#allocation2 + $0x39] sm:$0xff] %vm263_vm1, %v234_v22  ;;  %v581_v46 = vrot.slane %v483_v34, 1  ;;  %v826_v49 = vrot.slane %v728_v37, 2 }
  0x23   : > { %324 = vst.msk [vmem:[#allocation2 + $0x49] sm:$0xff] %vm263_vm1, %v235_v44  ;;  %325 = vst.msk [vmem:[#allocation2 + $0x51] sm:$0xff] %vm263_vm1, %v236_v53 }
  0x24   : > { %v582_v58 = vsel %vm577_vm3, %v579_v43, %v581_v46  ;;  %v827_v61 = vsel %vm822_vm4, %v824_v48, %v826_v49  ;;  %334 = vst.msk [vmem:[#allocation2 + $0xc1] sm:$0xff] %vm263_vm1, %v245_v55  ;;  %335 = vst.msk [vmem:[#allocation2 + $0xc9] sm:$0xff] %vm263_vm1, %v246_v56 }
  0x25   : > { %v691_v62 = vadd.f32 %v582_v58, %v414_v41  ;;  %336 = vst.msk [vmem:[#allocation2 + $0xd9] sm:$0xff] %vm263_vm1, %v247_v63  ;;  %337 = vst.msk [vmem:[#allocation2 + $0xe1] sm:$0xff] %vm263_vm1, %v248_v0 }
  0x26   : > { %338 = vst.msk [vmem:[#allocation2 + $0xf1] sm:$0xff] %vm263_vm1, %v249_v1  ;;  %339 = vst.msk [vmem:[#allocation2 + $0xf9] sm:$0xff] %vm263_vm1, %v250_v6 }
  0x27   : > { %v936_v17 = vadd.f32 %v827_v61, %v691_v62  ;;  %340 = vst.msk [vmem:[#allocation2 + $0x109] sm:$0xff] %vm263_vm1, %v251_v7 }
  0x28   : > { %v2689_v2 = vld [vmem:[#allocation2 + $0x18] sm:$0xff]  ;;  %v357_v3 = vld [vmem:[#allocation2 + $0x28] sm:$0x3]  ;;  %v2695_v8 = vld [vmem:[#allocation2 + $0x20] sm:$0xff] }
  0x29   : > { %v2697_v11 = vld [vmem:[#allocation2 + $0x40] sm:$0x3]  ;;  %v2700_v12 = vmul.f32 %v2641_v15, %v357_v3  ;;  %v2703_v13 = vmul.f32 %v2644_v16, %v357_v3  ;;  %v971_v18 = vmul.f32 %v2647_v21, %v2689_v2  ;;  %v972_v10 = vmul.f32 %v2647_v21, %v2695_v8  ;;  %v2726_v34 = vld [vmem:[#allocation2 + $0x30] sm:$0xff]  ;;  %v2728_v35 = vld [vmem:[#allocation2 + $0x38] sm:$0xff] }
  0x2a   : > { %v2712_v9 = vmul.f32 %v2641_v15, %v2697_v11  ;;  %v1039_v19 = vmul.f32 %v2649_v25, %v2689_v2  ;;  %v1040_v20 = vmul.f32 %v2649_v25, %v2695_v8  ;;  %v1041_v28 = vmul.f32 %v2649_v25, %v357_v3 }
  0x2b   : > { %v586_v22 = vrot.slane %v2700_v12, 1  ;;  %v831_v23 = vrot.slane %v2703_v13, 2  ;;  %v1003_v24 = vadd.f32 %v971_v18, %v935_v4  ;;  %v1004_v30 = vadd.f32 %v972_v10, %v936_v17 }
  0x2c   : > { %v591_v29 = vrot.slane %v2712_v9, 1  ;;  %v1135_v31 = vrot.slane %v1039_v19, 1  ;;  %v1136_v32 = vrot.slane %v1040_v20, 1  ;;  %v1138_v36 = vrot.slane %v1041_v28, 1 }
  0x2d   : > { %v1283_v37 = vmul.f32 %v2652_v26, %v2689_v2  ;;  %v1284_v38 = vmul.f32 %v2652_v26, %v2695_v8  ;;  %v1285_v39 = vmul.f32 %v2652_v26, %v357_v3  ;;  %v1527_v41 = vmul.f32 %v2655_v27, %v2726_v34 }
  0x2e   : > { %v1137_v40 = vsel %vm577_vm3, %v1135_v31, %v1136_v32  ;;  %v1528_v42 = vmul.f32 %v2655_v27, %v2728_v35  ;;  %v1595_v43 = vmul.f32 %v2665_v33, %v2726_v34  ;;  %v1139_v44 = vsel %vm577_vm3, %v1136_v32, %v1138_v36 }
  0x2f   : > { %v1247_v45 = vadd.f32 %v1137_v40, %v1003_v24  ;;  %v1379_v46 = vrot.slane %v1283_v37, 2  ;;  %v1380_v47 = vrot.slane %v1284_v38, 2  ;;  %v1248_v48 = vadd.f32 %v1139_v44, %v1004_v30 }
  0x30   : > { %v1382_v49 = vrot.slane %v1285_v39, 2  ;;  %v1596_v50 = vmul.f32 %v2665_v33, %v2728_v35  ;;  %v1597_v51 = vmul.f32 %v2665_v33, %v2697_v11  ;;  %v1691_v53 = vrot.slane %v1595_v43, 1 }
  0x31   : > { %v1381_v52 = vsel %vm822_vm4, %v1379_v46, %v1380_v47  ;;  %v1839_v54 = vmul.f32 %v2693_v5, %v2726_v34  ;;  %v1840_v55 = vmul.f32 %v2693_v5, %v2728_v35  ;;  %v1841_v61 = vmul.f32 %v2693_v5, %v2697_v11 }
  0x32   : > { %v1383_v56 = vsel %vm822_vm4, %v1380_v47, %v1382_v49  ;;  %v1491_v57 = vadd.f32 %v1381_v52, %v1247_v45  ;;  %v1692_v58 = vrot.slane %v1596_v50, 1  ;;  %v1694_v59 = vrot.slane %v1597_v51, 1 }
  0x33   : > { %v1492_v60 = vadd.f32 %v1383_v56, %v1248_v48  ;;  %v1935_v62 = vrot.slane %v1839_v54, 2  ;;  %v1936_v63 = vrot.slane %v1840_v55, 2  ;;  %v415_v4 = vmul.f32 %v2639_v14, %v2689_v2 }
  0x34   : > { %v1559_v0 = vadd.f32 %v1527_v41, %v1491_v57  ;;  %v1693_v1 = vsel %vm577_vm3, %v1691_v53, %v1692_v58  ;;  %v1695_v3 = vsel %vm577_vm3, %v1692_v58, %v1694_v59  ;;  %v1938_v17 = vrot.slane %v1841_v61, 2  ;;  %v2802_v59 = vld [vmem:[#allocation2 + $0x50] sm:$0xff] }
  0x35   : > { %v1560_v6 = vadd.f32 %v1528_v42, %v1492_v60  ;;  %v1937_v7 = vsel %vm822_vm4, %v1935_v62, %v1936_v63  ;;  %v416_v18 = vmul.f32 %v2639_v14, %v2695_v8  ;;  %v484_v19 = vmul.f32 %v2641_v15, %v2689_v2 }
  0x36   : > { %v1803_v10 = vadd.f32 %v1693_v1, %v1559_v0  ;;  %v485_v20 = vmul.f32 %v2641_v15, %v2695_v8  ;;  %v729_v24 = vmul.f32 %v2644_v16, %v2689_v2  ;;  %v1939_v30 = vsel %vm822_vm4, %v1936_v63, %v1938_v17  ;;  %v2804_v0 = vld [vmem:[#allocation2 + $0x58] sm:$0x3] }
  0x37   : > { %v1804_v28 = vadd.f32 %v1695_v3, %v1560_v6  ;;  %v730_v31 = vmul.f32 %v2644_v16, %v2695_v8  ;;  %v973_v32 = vmul.f32 %v2647_v21, %v2726_v34  ;;  %v583_v37 = vrot.slane %v484_v19, 1 }
  0x38   : > { %v2047_v36 = vadd.f32 %v1937_v7, %v1803_v10  ;;  %v584_v38 = vrot.slane %v485_v20, 1  ;;  %v828_v39 = vrot.slane %v729_v24, 2  ;;  %v974_v42 = vmul.f32 %v2647_v21, %v2728_v35 }
  0x39   : > { %v2048_v40 = vadd.f32 %v1939_v30, %v1804_v28  ;;  %v829_v41 = vrot.slane %v730_v31, 2  ;;  %v1042_v2 = vmul.f32 %v2649_v25, %v2726_v34  ;;  %v1043_v44 = vmul.f32 %v2649_v25, %v2728_v35 }
  0x3a   : > { %v585_v43 = vsel %vm577_vm3, %v583_v37, %v584_v38  ;;  %v587_v8 = vsel %vm577_vm3, %v584_v38, %v586_v22  ;;  %v1044_v45 = vmul.f32 %v2649_v25, %v2697_v11  ;;  %v2790_v22 = vld [vmem:[#allocation2 + $0x48] sm:$0xff]  ;;  %v1286_v55 = vmul.f32 %v2652_v26, %v2726_v34  ;;  %v376_v37 = vld [vmem:[#allocation2 + $0xc0] sm:$0xff] }
  0x3b   : > { %v2079_v46 = vpack.c.bf16 %v2048_v40, %v2047_v36  ;;  %v692_v47 = vadd.f32 %v585_v43, %v415_v4  ;;  %v693_v48 = vadd.f32 %v587_v8, %v416_v18  ;;  %v830_v49 = vsel %vm822_vm4, %v828_v39, %v829_v41  ;;  %v377_v38 = vld [vmem:[#allocation2 + $0xc8] sm:$0xff] }
  0x3c   : > { %v832_v50 = vsel %vm822_vm4, %v829_v41, %v831_v23  ;;  %v1140_v51 = vrot.slane %v1042_v2, 1  ;;  %v1141_v52 = vrot.slane %v1043_v44, 1  ;;  %v1143_v12 = vrot.slane %v1044_v45, 1 }
  0x3d   : > { %2453 = vmatprep.mubr.msk.bf16.mxu0 %vm263_vm1, %v2079_v46  ;;  %v937_v53 = vadd.f32 %v830_v49, %v692_v47  ;;  %v938_v54 = vadd.f32 %v832_v50, %v693_v48  ;;  %v1287_v56 = vmul.f32 %v2652_v26, %v2728_v35  ;;  %v1288_v23 = vmul.f32 %v2652_v26, %v2697_v11  ;;  %v2825_v46 = vld [vmem:[#allocation2 + $0x100] sm:$0x3] }
  0x3e   : > { %v1142_v57 = vsel %vm577_vm3, %v1140_v51, %v1141_v52  ;;  %v1144_v13 = vsel %vm577_vm3, %v1141_v52, %v1143_v12  ;;  %v1529_v58 = vmul.f32 %v2655_v27, %v2790_v22  ;;  %v1384_v62 = vrot.slane %v1286_v55, 2 }
  0x3f   : > { %v1005_v60 = vadd.f32 %v973_v32, %v937_v53  ;;  %v1006_v61 = vadd.f32 %v974_v42, %v938_v54  ;;  %v1385_v63 = vrot.slane %v1287_v56, 2  ;;  %v1387_v1 = vrot.slane %v1288_v23, 2  ;;  %v378_v42 = vld [vmem:[#allocation2 + $0xd0] sm:$0x3] }
  0x40   : > { %v1530_v3 = vmul.f32 %v2655_v27, %v2802_v59  ;;  %v1598_v4 = vmul.f32 %v2665_v33, %v2790_v22  ;;  %v1599_v6 = vmul.f32 %v2665_v33, %v2802_v59  ;;  %v1600_v10 = vmul.f32 %v2665_v33, %v2804_v0 }
  0x41   : > { %v1249_v7 = vadd.f32 %v1142_v57, %v1005_v60  ;;  %v1250_v17 = vadd.f32 %v1144_v13, %v1006_v61  ;;  %v1386_v18 = vsel %vm822_vm4, %v1384_v62, %v1385_v63  ;;  %v1388_v19 = vsel %vm822_vm4, %v1385_v63, %v1387_v1 }
  0x42   : > { %v1696_v20 = vrot.slane %v1598_v4, 1  ;;  %v1697_v24 = vrot.slane %v1599_v6, 1  ;;  %v1842_v28 = vmul.f32 %v2693_v5, %v2790_v22  ;;  %v1699_v32 = vrot.slane %v1600_v10, 1  ;;  %v2842_v4 = vld [vmem:[#allocation2 + $0xd8] sm:$0xff]  ;;  %v2847_v10 = vld [vmem:[#allocation2 + $0xe8] sm:$0x3] }
  0x43   : > { %v1493_v30 = vadd.f32 %v1386_v18, %v1249_v7  ;;  %v1494_v31 = vadd.f32 %v1388_v19, %v1250_v17  ;;  %v1843_v36 = vmul.f32 %v2693_v5, %v2802_v59  ;;  %v1844_v40 = vmul.f32 %v2693_v5, %v2804_v0  ;;  %v2845_v18 = vld [vmem:[#allocation2 + $0xe0] sm:$0xff] }
  0x44   : > { %v1698_v39 = vsel %vm577_vm3, %v1696_v20, %v1697_v24  ;;  %v1940_v41 = vrot.slane %v1842_v28, 2  ;;  %v429_v2 = vmul.f32 %v2639_v14, %v376_v37  ;;  %v1700_v44 = vsel %vm577_vm3, %v1697_v24, %v1699_v32 }
  0x45   : > { %v1561_v43 = vadd.f32 %v1529_v58, %v1493_v30  ;;  %v1562_v8 = vadd.f32 %v1530_v3, %v1494_v31  ;;  %v1941_v45 = vrot.slane %v1843_v36, 2  ;;  %v1943_v47 = vrot.slane %v1844_v40, 2 }
  0x46   : > { %v430_v48 = vmul.f32 %v2639_v14, %v377_v38  ;;  %v505_v49 = vmul.f32 %v2641_v15, %v376_v37  ;;  %v506_v50 = vmul.f32 %v2641_v15, %v377_v38  ;;  %v507_v53 = vmul.f32 %v2641_v15, %v378_v42 }
  0x47   : > { %v1805_v51 = vadd.f32 %v1698_v39, %v1561_v43  ;;  %v1806_v52 = vadd.f32 %v1700_v44, %v1562_v8  ;;  %v1942_v12 = vsel %vm822_vm4, %v1940_v41, %v1941_v45  ;;  %v1944_v54 = vsel %vm822_vm4, %v1941_v45, %v1943_v47  ;;  %v2866_v8 = vld [vmem:[#allocation2 + $0xf0] sm:$0xff] }
  0x48   : > { %v2835_v55 = vmul.f32 %v2641_v15, %v2825_v46  ;;  %v618_v56 = vrot.slane %v505_v49, 1  ;;  %v619_v57 = vrot.slane %v506_v50, 1  ;;  %v621_v58 = vrot.slane %v507_v53, 1  ;;  %v2870_v49 = vld [vmem:[#allocation2 + $0xf8] sm:$0xff] }
  0x49   : > { %v2049_v13 = vadd.f32 %v1942_v12, %v1805_v51  ;;  %v2050_v23 = vadd.f32 %v1944_v54, %v1806_v52  ;;  %v750_v60 = vmul.f32 %v2644_v16, %v376_v37  ;;  %v751_v63 = vmul.f32 %v2644_v16, %v377_v38 }
  0x4a   : > { %v620_v61 = vsel %vm577_vm3, %v618_v56, %v619_v57  ;;  %v631_v62 = vrot.slane %v2835_v55, 1  ;;  %v752_v1 = vmul.f32 %v2644_v16, %v378_v42  ;;  %v622_v6 = vsel %vm577_vm3, %v619_v57, %v621_v58 }
  0x4b   : > { %v2080_v3 = vpack.c.bf16 %v2050_v23, %v2049_v13  ;;  %v706_v7 = vadd.f32 %v620_v61, %v429_v2  ;;  %v863_v17 = vrot.slane %v750_v60, 2  ;;  %v707_v19 = vadd.f32 %v622_v6, %v430_v48  ;;  %v220_v6 = vld [vmem:[%s2629_s27 + $0xa8] sm:$0xff] }
  0x4c   : > { %v864_v20 = vrot.slane %v751_v63, 2  ;;  %v866_v24 = vrot.slane %v752_v1, 2  ;;  %v987_v28 = vmul.f32 %v2647_v21, %v2842_v4  ;;  %v988_v30 = vmul.f32 %v2647_v21, %v2845_v18 }
  0x4d   : > { %2454 = vmatmul.mubr.msk.bf16.vlgmr.msra.gmra.mrb[0].mxu0 %vm263_vm1, %v2080_v3  ;;  %v1063_v31 = vmul.f32 %v2649_v25, %v2842_v4  ;;  %v1064_v32 = vmul.f32 %v2649_v25, %v2845_v18  ;;  %v1065_v36 = vmul.f32 %v2649_v25, %v2847_v10  ;;  %v1307_v39 = vmul.f32 %v2652_v26, %v2842_v4 }
  0x4e   : > { %v865_v37 = vsel %vm822_vm4, %v863_v17, %v864_v20  ;;  %v867_v38 = vsel %vm822_vm4, %v864_v20, %v866_v24  ;;  %v1308_v40 = vmul.f32 %v2652_v26, %v2845_v18  ;;  %v1309_v45 = vmul.f32 %v2652_v26, %v2847_v10 }
  0x4f   : > { %v951_v41 = vadd.f32 %v865_v37, %v706_v7  ;;  %v952_v42 = vadd.f32 %v867_v38, %v707_v19  ;;  %v1175_v2 = vrot.slane %v1063_v31, 1  ;;  %v1176_v43 = vrot.slane %v1064_v32, 1 }
  0x50   : > { %v1178_v44 = vrot.slane %v1065_v36, 1  ;;  %v1419_v47 = vrot.slane %v1307_v39, 2  ;;  %v1420_v48 = vrot.slane %v1308_v40, 2  ;;  %v1543_v12 = vmul.f32 %v2655_v27, %v2866_v8 }
  0x51   : > { %v1019_v50 = vadd.f32 %v987_v28, %v951_v41  ;;  %v1020_v51 = vadd.f32 %v988_v30, %v952_v42  ;;  %v1177_v52 = vsel %vm577_vm3, %v1175_v2, %v1176_v43  ;;  %v1422_v56 = vrot.slane %v1309_v45, 2 }
  0x52   : > { %v1179_v53 = vsel %vm577_vm3, %v1176_v43, %v1178_v44  ;;  %v1421_v54 = vsel %vm822_vm4, %v1419_v47, %v1420_v48  ;;  %v1544_v57 = vmul.f32 %v2655_v27, %v2870_v49  ;;  %v1619_v58 = vmul.f32 %v2665_v33, %v2866_v8 }
  0x53   : > { %v1263_v13 = vadd.f32 %v1177_v52, %v1019_v50  ;;  %v1264_v23 = vadd.f32 %v1179_v53, %v1020_v51  ;;  %v1620_v60 = vmul.f32 %v2665_v33, %v2870_v49  ;;  %v1423_v61 = vsel %vm822_vm4, %v1420_v48, %v1422_v56 }
  0x54   : > { %v1621_v63 = vmul.f32 %v2665_v33, %v2825_v46  ;;  %v1863_v1 = vmul.f32 %v2693_v5, %v2866_v8  ;;  %v1864_v3 = vmul.f32 %v2693_v5, %v2870_v49  ;;  %v1731_v19 = vrot.slane %v1619_v58, 1 }
  0x55   : > { %v1507_v7 = vadd.f32 %v1421_v54, %v1263_v13  ;;  %v1508_v17 = vadd.f32 %v1423_v61, %v1264_v23  ;;  %v1732_v20 = vrot.slane %v1620_v60, 1  ;;  %v1865_v28 = vmul.f32 %v2693_v5, %v2825_v46 }
  0x56   : > { %v1734_v24 = vrot.slane %v1621_v63, 1  ;;  %v1975_v30 = vrot.slane %v1863_v1, 2  ;;  %v1976_v31 = vrot.slane %v1864_v3, 2  ;;  %v252_v38 = vmax.f32 %v220_v6, 0.0 }
  0x57   : > { %v1575_v32 = vadd.f32 %v1543_v12, %v1507_v7  ;;  %v1576_v36 = vadd.f32 %v1544_v57, %v1508_v17  ;;  %v1733_v37 = vsel %vm577_vm3, %v1731_v19, %v1732_v20  ;;  %v1978_v41 = vrot.slane %v1865_v28, 2 }
  0x58   : > { %v1735_v39 = vsel %vm577_vm3, %v1732_v20, %v1734_v24  ;;  %v1977_v40 = vsel %vm822_vm4, %v1975_v30, %v1976_v31  ;;  %v431_v42 = vmul.f32 %v2639_v14, %v2842_v4  ;;  %341 = vst.msk [vmem:[#allocation2 + $0x111] sm:$0xff] %vm263_vm1, %v252_v38  ;;  %v432_v44 = vmul.f32 %v2639_v14, %v2845_v18  ;;  %v2931_v30 = vld [vmem:[#allocation2 + $0x108] sm:$0xff] }
  0x59   : > { %v1819_v2 = vadd.f32 %v1733_v37, %v1575_v32  ;;  %v1820_v43 = vadd.f32 %v1735_v39, %v1576_v36  ;;  %v508_v45 = vmul.f32 %v2641_v15, %v2842_v4  ;;  %v1979_v47 = vsel %vm822_vm4, %v1976_v31, %v1978_v41 }
  0x5a   : > { %v509_v48 = vmul.f32 %v2641_v15, %v2845_v18  ;;  %v510_v50 = vmul.f32 %v2641_v15, %v2847_v10  ;;  %v753_v51 = vmul.f32 %v2644_v16, %v2842_v4  ;;  %v754_v54 = vmul.f32 %v2644_v16, %v2845_v18 }
  0x5b   : > { %v2063_v52 = vadd.f32 %v1977_v40, %v1819_v2  ;;  %v2064_v12 = vadd.f32 %v1979_v47, %v1820_v43  ;;  %v623_v53 = vrot.slane %v508_v45, 1  ;;  %v755_v13 = vmul.f32 %v2644_v16, %v2847_v10 }
  0x5c   : > { %v624_v56 = vrot.slane %v509_v48, 1  ;;  %v626_v57 = vrot.slane %v510_v50, 1  ;;  %v868_v23 = vrot.slane %v753_v51, 2  ;;  %v869_v60 = vrot.slane %v754_v54, 2 }
  0x5d   : > { %v2087_v58 = vpack.c.bf16 %v2064_v12, %v2063_v52  ;;  %v989_v61 = vmul.f32 %v2647_v21, %v2866_v8  ;;  %v990_v4 = vmul.f32 %v2647_v21, %v2870_v49  ;;  %v871_v3 = vrot.slane %v755_v13, 2 }
  0x5e   : > { %v625_v63 = vsel %vm577_vm3, %v623_v53, %v624_v56  ;;  %v627_v1 = vsel %vm577_vm3, %v624_v56, %v626_v57  ;;  %v1066_v18 = vmul.f32 %v2649_v25, %v2866_v8  ;;  %v870_v7 = vsel %vm822_vm4, %v868_v23, %v869_v60  ;;  %v205_v57 = vld [vmem:[%s2629_s27 + $0x30] sm:$0xff] }
  0x5f   : > { %2469 = vmatprep.mubr.msk.bf16.mxu1 %vm263_vm1, %v2087_v58  ;;  %v708_v10 = vadd.f32 %v625_v63, %v431_v42  ;;  %v709_v6 = vadd.f32 %v627_v1, %v432_v44  ;;  %v1067_v17 = vmul.f32 %v2649_v25, %v2870_v49  ;;  %v872_v19 = vsel %vm822_vm4, %v869_v60, %v871_v3  ;;  %v2939_v42 = vld [vmem:[#allocation2 + $0x110] sm:$0xff]  ;;  %v2947_v52 = vld [vmem:[#allocation2 + $0x118] sm:$0x3] }
  0x60   : > { %v1068_v20 = vmul.f32 %v2649_v25, %v2825_v46  ;;  %v1180_v24 = vrot.slane %v1066_v18, 1  ;;  %v1310_v28 = vmul.f32 %v2652_v26, %v2866_v8  ;;  %v1311_v37 = vmul.f32 %v2652_v26, %v2870_v49  ;;  %v206_v3 = vld [vmem:[%s2629_s27 + $0x38] sm:$0xff] }
  0x61   : > { %v953_v31 = vadd.f32 %v870_v7, %v708_v10  ;;  %v954_v32 = vadd.f32 %v872_v19, %v709_v6  ;;  %v1181_v36 = vrot.slane %v1067_v17, 1  ;;  %v1312_v39 = vmul.f32 %v2652_v26, %v2825_v46 }
  0x62   : > { %v1183_v38 = vrot.slane %v1068_v20, 1  ;;  %v1424_v40 = vrot.slane %v1310_v28, 2  ;;  %v1545_v41 = vmul.f32 %v2655_v27, %v2931_v30  ;;  %v1425_v45 = vrot.slane %v1311_v37, 2 }
  0x63   : > { %v1021_v2 = vadd.f32 %v989_v61, %v953_v31  ;;  %v1022_v43 = vadd.f32 %v990_v4, %v954_v32  ;;  %v1182_v44 = vsel %vm577_vm3, %v1180_v24, %v1181_v36  ;;  %v1427_v48 = vrot.slane %v1312_v39, 2 }
  0x64   : > { %v1184_v47 = vsel %vm577_vm3, %v1181_v36, %v1183_v38  ;;  %v1546_v50 = vmul.f32 %v2655_v27, %v2939_v42  ;;  %v1622_v51 = vmul.f32 %v2665_v33, %v2931_v30  ;;  %v1426_v54 = vsel %vm822_vm4, %v1424_v40, %v1425_v45 }
  0x65   : > { %v1265_v12 = vadd.f32 %v1182_v44, %v1021_v2  ;;  %v1266_v53 = vadd.f32 %v1184_v47, %v1022_v43  ;;  %v1623_v56 = vmul.f32 %v2665_v33, %v2939_v42  ;;  %v1428_v13 = vsel %vm822_vm4, %v1425_v45, %v1427_v48 }
  0x66   : > { %v1624_v23 = vmul.f32 %v2665_v33, %v2947_v52  ;;  %v1736_v58 = vrot.slane %v1622_v51, 1  ;;  %v1866_v60 = vmul.f32 %v2693_v5, %v2931_v30  ;;  %v1867_v1 = vmul.f32 %v2693_v5, %v2939_v42 }
  0x67   : > { %v1509_v61 = vadd.f32 %v1426_v54, %v1265_v12  ;;  %v1510_v4 = vadd.f32 %v1428_v13, %v1266_v53  ;;  %v1737_v63 = vrot.slane %v1623_v56, 1  ;;  %v1868_v10 = vmul.f32 %v2693_v5, %v2947_v52 }
  0x68   : > { %v1739_v18 = vrot.slane %v1624_v23, 1  ;;  %v1980_v6 = vrot.slane %v1866_v60, 2  ;;  %v237_v7 = vmax.f32 %v205_v57, 0.0  ;;  %v1981_v24 = vrot.slane %v1867_v1, 2 }
  0x69   : > { %v1577_v17 = vadd.f32 %v1545_v41, %v1509_v61  ;;  %v1578_v19 = vadd.f32 %v1546_v50, %v1510_v4  ;;  %v1738_v20 = vsel %vm577_vm3, %v1736_v58, %v1737_v63  ;;  %v1983_v31 = vrot.slane %v1868_v10, 2 }
  0x6a   : > { %v1740_v28 = vsel %vm577_vm3, %v1737_v63, %v1739_v18  ;;  %v238_v32 = vmax.f32 %v206_v3, 0.0  ;;  %326 = vst.msk [vmem:[#allocation2 + $0x61] sm:$0xff] %vm263_vm1, %v237_v7  ;;  %v417_v36 = vmul.f32 %v2639_v14, %v2726_v34  ;;  %v1982_v39 = vsel %vm822_vm4, %v1980_v6, %v1981_v24 }
  0x6b   : > { %v1821_v37 = vadd.f32 %v1738_v20, %v1577_v17  ;;  %v1822_v38 = vadd.f32 %v1740_v28, %v1578_v19  ;;  %v418_v40 = vmul.f32 %v2639_v14, %v2728_v35  ;;  %v1984_v41 = vsel %vm822_vm4, %v1981_v24, %v1983_v31 }
  0x6c   : > { %327 = vst.msk [vmem:[#allocation2 + $0x69] sm:$0xff] %vm263_vm1, %v238_v32  ;;  %v487_v2 = vmul.f32 %v2641_v15, %v2726_v34  ;;  %v488_v43 = vmul.f32 %v2641_v15, %v2728_v35  ;;  %v732_v44 = vmul.f32 %v2644_v16, %v2726_v34  ;;  %v733_v48 = vmul.f32 %v2644_v16, %v2728_v35 }
  0x6d   : > { %v2065_v45 = vadd.f32 %v1982_v39, %v1821_v37  ;;  %v2066_v47 = vadd.f32 %v1984_v41, %v1822_v38  ;;  %v734_v50 = vmul.f32 %v2644_v16, %v2697_v11  ;;  %v975_v54 = vmul.f32 %v2647_v21, %v2790_v22 }
  0x6e   : > { %v588_v51 = vrot.slane %v487_v2, 1  ;;  %v589_v12 = vrot.slane %v488_v43, 1  ;;  %v833_v53 = vrot.slane %v732_v44, 2  ;;  %v834_v57 = vrot.slane %v733_v48, 2 }
  0x6f   : > { %v2088_v56 = vpack.c.bf16 %v2066_v47, %v2065_v45  ;;  %v836_v13 = vrot.slane %v734_v50, 2  ;;  %v976_v34 = vmul.f32 %v2647_v21, %v2802_v59  ;;  %v1045_v11 = vmul.f32 %v2649_v25, %v2790_v22  ;;  %v207_v50 = vld [vmem:[%s2629_s27 + $0x40] sm:$0xff] }
  0x70   : > { %v590_v23 = vsel %vm577_vm3, %v588_v51, %v589_v12  ;;  %v592_v35 = vsel %vm577_vm3, %v589_v12, %v591_v29  ;;  %v1046_v58 = vmul.f32 %v2649_v25, %v2802_v59  ;;  %v835_v4 = vsel %vm822_vm4, %v833_v53, %v834_v57 }
  0x71   : > { %2470 = vmatmul.mubr.msk.bf16.vlgmr.msra.gmra.mrb[0].mxu1 %vm263_vm1, %v2088_v56  ;;  %v694_v60 = vadd.f32 %v590_v23, %v417_v36  ;;  %v695_v61 = vadd.f32 %v592_v35, %v418_v40  ;;  %v837_v63 = vsel %vm822_vm4, %v834_v57, %v836_v13  ;;  %v1047_v1 = vmul.f32 %v2649_v25, %v2804_v0  ;;  %v3002_v18 = vld [vmem:[#allocation2 + $0x60] sm:$0xff]  ;;  %v208_v23 = vld [vmem:[%s2629_s27 + $0x48] sm:$0xff] }
  0x72   : > { %v1145_v9 = vrot.slane %v1045_v11, 1  ;;  %v1146_v3 = vrot.slane %v1046_v58, 1  ;;  %v1289_v29 = vmul.f32 %v2652_v26, %v2790_v22  ;;  %v1290_v7 = vmul.f32 %v2652_v26, %v2802_v59 }
  0x73   : > { %v939_v10 = vadd.f32 %v835_v4, %v694_v60  ;;  %v940_v6 = vadd.f32 %v837_v63, %v695_v61  ;;  %v1291_v17 = vmul.f32 %v2652_v26, %v2804_v0  ;;  %v1148_v20 = vrot.slane %v1047_v1, 1  ;;  %v3011_v31 = vld [vmem:[#allocation2 + $0x68] sm:$0xff]  ;;  %v3020_v43 = vld [vmem:[#allocation2 + $0x70] sm:$0x3] }
  0x74   : > { %v1147_v19 = vsel %vm577_vm3, %v1145_v9, %v1146_v3  ;;  %v1389_v24 = vrot.slane %v1289_v29, 2  ;;  %v1531_v28 = vmul.f32 %v2655_v27, %v3002_v18  ;;  %v1390_v37 = vrot.slane %v1290_v7, 2 }
  0x75   : > { %v1007_v32 = vadd.f32 %v975_v54, %v939_v10  ;;  %v1008_v36 = vadd.f32 %v976_v34, %v940_v6  ;;  %v1392_v38 = vrot.slane %v1291_v17, 2  ;;  %v1149_v39 = vsel %vm577_vm3, %v1146_v3, %v1148_v20 }
  0x76   : > { %v1532_v40 = vmul.f32 %v2655_v27, %v3011_v31  ;;  %v1601_v41 = vmul.f32 %v2665_v33, %v3002_v18  ;;  %v1602_v2 = vmul.f32 %v2665_v33, %v3011_v31  ;;  %v1391_v47 = vsel %vm822_vm4, %v1389_v24, %v1390_v37 }
  0x77   : > { %v1251_v44 = vadd.f32 %v1147_v19, %v1007_v32  ;;  %v1252_v45 = vadd.f32 %v1149_v39, %v1008_v36  ;;  %v1393_v48 = vsel %vm822_vm4, %v1390_v37, %v1392_v38  ;;  %v1603_v51 = vmul.f32 %v2665_v33, %v3020_v43 }
  0x78   : > { %v1701_v12 = vrot.slane %v1601_v41, 1  ;;  %v1702_v53 = vrot.slane %v1602_v2, 1  ;;  %v1845_v54 = vmul.f32 %v2693_v5, %v3002_v18  ;;  %v1846_v13 = vmul.f32 %v2693_v5, %v3011_v31 }
  0x79   : > { %v1495_v56 = vadd.f32 %v1391_v47, %v1251_v44  ;;  %v1496_v57 = vadd.f32 %v1393_v48, %v1252_v45  ;;  %v1847_v34 = vmul.f32 %v2693_v5, %v3020_v43  ;;  %v1704_v11 = vrot.slane %v1603_v51, 1 }
  0x7a   : > { %v1703_v35 = vsel %vm577_vm3, %v1701_v12, %v1702_v53  ;;  %v1945_v58 = vrot.slane %v1845_v54, 2  ;;  %v239_v60 = vmax.f32 %v207_v50, 0.0  ;;  %v1946_v63 = vrot.slane %v1846_v13, 2 }
  0x7b   : > { %v1563_v61 = vadd.f32 %v1531_v28, %v1495_v56  ;;  %v1564_v4 = vadd.f32 %v1532_v40, %v1496_v57  ;;  %v1948_v1 = vrot.slane %v1847_v34, 2  ;;  %v1705_v9 = vsel %vm577_vm3, %v1702_v53, %v1704_v11 }
  0x7c   : > { %v240_v3 = vmax.f32 %v208_v23, 0.0  ;;  %328 = vst.msk [vmem:[#allocation2 + $0x79] sm:$0xff] %vm263_vm1, %v239_v60  ;;  %v419_v29 = vmul.f32 %v2639_v14, %v2790_v22  ;;  %v420_v10 = vmul.f32 %v2639_v14, %v2802_v59  ;;  %v1947_v17 = vsel %vm822_vm4, %v1945_v58, %v1946_v63 }
  0x7d   : > { %v1807_v6 = vadd.f32 %v1703_v35, %v1563_v61  ;;  %v1808_v7 = vadd.f32 %v1705_v9, %v1564_v4  ;;  %v1949_v19 = vsel %vm822_vm4, %v1946_v63, %v1948_v1  ;;  %v490_v20 = vmul.f32 %v2641_v15, %v2790_v22 }
  0x7e   : > { %329 = vst.msk [vmem:[#allocation2 + $0x81] sm:$0xff] %vm263_vm1, %v240_v3  ;;  %v491_v24 = vmul.f32 %v2641_v15, %v2802_v59  ;;  %v492_v28 = vmul.f32 %v2641_v15, %v2804_v0  ;;  %v735_v32 = vmul.f32 %v2644_v16, %v2790_v22  ;;  %v736_v38 = vmul.f32 %v2644_v16, %v2802_v59 }
  0x7f   : > { %v2051_v36 = vadd.f32 %v1947_v17, %v1807_v6  ;;  %v2052_v37 = vadd.f32 %v1949_v19, %v1808_v7  ;;  %v737_v39 = vmul.f32 %v2644_v16, %v2804_v0  ;;  %v593_v40 = vrot.slane %v490_v20, 1 }
  0x80   : > { %v594_v41 = vrot.slane %v491_v24, 1  ;;  %v596_v2 = vrot.slane %v492_v28, 1  ;;  %v838_v44 = vrot.slane %v735_v32, 2  ;;  %v839_v47 = vrot.slane %v736_v38, 2 }
  0x81   : > { %v2081_v45 = vpack.c.bf16 %v2052_v37, %v2051_v36  ;;  %v841_v48 = vrot.slane %v737_v39, 2  ;;  %v977_v50 = vmul.f32 %v2647_v21, %v3002_v18  ;;  %v978_v59 = vmul.f32 %v2647_v21, %v3011_v31  ;;  %v221_v39 = vld [vmem:[%s2629_s27 + $0xb0] sm:$0xff] }
  0x82   : > { %v595_v22 = vsel %vm577_vm3, %v593_v40, %v594_v41  ;;  %v597_v51 = vsel %vm577_vm3, %v594_v41, %v596_v2  ;;  %v1048_v0 = vmul.f32 %v2649_v25, %v3002_v18  ;;  %v840_v54 = vsel %vm822_vm4, %v838_v44, %v839_v47 }
  0x83   : > { %2457 = vmatprep.mubr.msk.bf16.mxu0 %vm263_vm1, %v2081_v45  ;;  %v696_v12 = vadd.f32 %v595_v22, %v419_v29  ;;  %v697_v53 = vadd.f32 %v597_v51, %v420_v10  ;;  %v842_v56 = vsel %vm822_vm4, %v839_v47, %v841_v48  ;;  %v1049_v57 = vmul.f32 %v2649_v25, %v3011_v31  ;;  %v3073_v35 = vld [vmem:[#allocation2 + $0x78] sm:$0xff] }
  0x84   : > { %v1050_v13 = vmul.f32 %v2649_v25, %v3020_v43  ;;  %v1150_v34 = vrot.slane %v1048_v0, 1  ;;  %v1292_v23 = vmul.f32 %v2652_v26, %v3002_v18  ;;  %v1293_v60 = vmul.f32 %v2652_v26, %v3011_v31  ;;  %v222_v22 = vld [vmem:[%s2629_s27 + $0xb8] sm:$0xff] }
  0x85   : > { %v941_v11 = vadd.f32 %v840_v54, %v696_v12  ;;  %v942_v58 = vadd.f32 %v842_v56, %v697_v53  ;;  %v1294_v61 = vmul.f32 %v2652_v26, %v3020_v43  ;;  %v1151_v4 = vrot.slane %v1049_v57, 1  ;;  %v3081_v3 = vld [vmem:[#allocation2 + $0x80] sm:$0xff]  ;;  %v3089_v28 = vld [vmem:[#allocation2 + $0x88] sm:$0x3] }
  0x86   : > { %v1153_v63 = vrot.slane %v1050_v13, 1  ;;  %v1394_v1 = vrot.slane %v1292_v23, 2  ;;  %v1533_v9 = vmul.f32 %v2655_v27, %v3073_v35  ;;  %v1395_v6 = vrot.slane %v1293_v60, 2 }
  0x87   : > { %v1009_v29 = vadd.f32 %v977_v50, %v941_v11  ;;  %v1010_v10 = vadd.f32 %v978_v59, %v942_v58  ;;  %v1397_v7 = vrot.slane %v1294_v61, 2  ;;  %v1152_v17 = vsel %vm577_vm3, %v1150_v34, %v1151_v4 }
  0x88   : > { %v1154_v19 = vsel %vm577_vm3, %v1151_v4, %v1153_v63  ;;  %v1534_v20 = vmul.f32 %v2655_v27, %v3081_v3  ;;  %v1604_v24 = vmul.f32 %v2665_v33, %v3073_v35  ;;  %v1396_v37 = vsel %vm822_vm4, %v1394_v1, %v1395_v6 }
  0x89   : > { %v1253_v32 = vadd.f32 %v1152_v17, %v1009_v29  ;;  %v1254_v36 = vadd.f32 %v1154_v19, %v1010_v10  ;;  %v1398_v38 = vsel %vm822_vm4, %v1395_v6, %v1397_v7  ;;  %v1605_v40 = vmul.f32 %v2665_v33, %v3081_v3 }
  0x8a   : > { %v1606_v41 = vmul.f32 %v2665_v33, %v3089_v28  ;;  %v1706_v2 = vrot.slane %v1604_v24, 1  ;;  %v1848_v44 = vmul.f32 %v2693_v5, %v3073_v35  ;;  %v1849_v48 = vmul.f32 %v2693_v5, %v3081_v3 }
  0x8b   : > { %v1497_v45 = vadd.f32 %v1396_v37, %v1253_v32  ;;  %v1498_v47 = vadd.f32 %v1398_v38, %v1254_v36  ;;  %v1850_v50 = vmul.f32 %v2693_v5, %v3089_v28  ;;  %v1707_v51 = vrot.slane %v1605_v40, 1 }
  0x8c   : > { %v1709_v59 = vrot.slane %v1606_v41, 1  ;;  %v1950_v0 = vrot.slane %v1848_v44, 2  ;;  %v253_v12 = vmax.f32 %v221_v39, 0.0  ;;  %v1951_v56 = vrot.slane %v1849_v48, 2 }
  0x8d   : > { %v1565_v53 = vadd.f32 %v1533_v9, %v1497_v45  ;;  %v1566_v54 = vadd.f32 %v1534_v20, %v1498_v47  ;;  %v1953_v57 = vrot.slane %v1850_v50, 2  ;;  %v1708_v13 = vsel %vm577_vm3, %v1706_v2, %v1707_v51 }
  0x8e   : > { %v1710_v34 = vsel %vm577_vm3, %v1707_v51, %v1709_v59  ;;  %v254_v23 = vmax.f32 %v222_v22, 0.0  ;;  %342 = vst.msk [vmem:[#allocation2 + $0x121] sm:$0xff] %vm263_vm1, %v253_v12  ;;  %v433_v11 = vmul.f32 %v2639_v14, %v2866_v8  ;;  %v1952_v61 = vsel %vm822_vm4, %v1950_v0, %v1951_v56 }
  0x8f   : > { %v1809_v58 = vadd.f32 %v1708_v13, %v1565_v53  ;;  %v1810_v60 = vadd.f32 %v1710_v34, %v1566_v54  ;;  %v1954_v4 = vsel %vm822_vm4, %v1951_v56, %v1953_v57  ;;  %v434_v63 = vmul.f32 %v2639_v14, %v2870_v49 }
  0x90   : > { %343 = vst.msk [vmem:[#allocation2 + $0x129] sm:$0xff] %vm263_vm1, %v254_v23  ;;  %v511_v1 = vmul.f32 %v2641_v15, %v2866_v8  ;;  %v512_v9 = vmul.f32 %v2641_v15, %v2870_v49  ;;  %v756_v29 = vmul.f32 %v2644_v16, %v2866_v8  ;;  %v757_v7 = vmul.f32 %v2644_v16, %v2870_v49 }
  0x91   : > { %v2053_v10 = vadd.f32 %v1952_v61, %v1809_v58  ;;  %v2054_v6 = vadd.f32 %v1954_v4, %v1810_v60  ;;  %v758_v17 = vmul.f32 %v2644_v16, %v2825_v46  ;;  %v991_v32 = vmul.f32 %v2647_v21, %v2931_v30 }
  0x92   : > { %v628_v19 = vrot.slane %v511_v1, 1  ;;  %v629_v20 = vrot.slane %v512_v9, 1  ;;  %v873_v24 = vrot.slane %v756_v29, 2  ;;  %v874_v37 = vrot.slane %v757_v7, 2 }
  0x93   : > { %v2082_v36 = vpack.c.bf16 %v2054_v6, %v2053_v10  ;;  %v876_v38 = vrot.slane %v758_v17, 2  ;;  %v992_v8 = vmul.f32 %v2647_v21, %v2939_v42  ;;  %v1069_v46 = vmul.f32 %v2649_v25, %v2931_v30  ;;  %v223_v6 = vld [vmem:[%s2629_s27 + $0xc0] sm:$0xff] }
  0x94   : > { %v630_v39 = vsel %vm577_vm3, %v628_v19, %v629_v20  ;;  %v632_v49 = vsel %vm577_vm3, %v629_v20, %v631_v62  ;;  %v1070_v40 = vmul.f32 %v2649_v25, %v2939_v42  ;;  %v875_v44 = vsel %vm822_vm4, %v873_v24, %v874_v37 }
  0x95   : > { %2458 = vmatmul.mubr.msk.bf16.gmra.mrb[4].mxu0 %vm263_vm1, %v2082_v36  ;;  %v710_v41 = vadd.f32 %v630_v39, %v433_v11  ;;  %v711_v2 = vadd.f32 %v632_v49, %v434_v63  ;;  %v877_v45 = vsel %vm822_vm4, %v874_v37, %v876_v38  ;;  %v1071_v47 = vmul.f32 %v2649_v25, %v2947_v52  ;;  %v3144_v50 = vld [vmem:[#allocation2 + $0x120] sm:$0xff]  ;;  %v224_v38 = vld [vmem:[%s2629_s27 + $0xc8] sm:$0xff] }
  0x96   : > { %v1185_v55 = vrot.slane %v1069_v46, 1  ;;  %v1186_v48 = vrot.slane %v1070_v40, 1  ;;  %v1313_v62 = vmul.f32 %v2652_v26, %v2931_v30  ;;  %v1314_v59 = vmul.f32 %v2652_v26, %v2939_v42 }
  0x97   : > { %v955_v22 = vadd.f32 %v875_v44, %v710_v41  ;;  %v956_v51 = vadd.f32 %v877_v45, %v711_v2  ;;  %v1315_v0 = vmul.f32 %v2652_v26, %v2947_v52  ;;  %v1188_v53 = vrot.slane %v1071_v47, 1  ;;  %v3153_v57 = vld [vmem:[#allocation2 + $0x128] sm:$0xff]  ;;  %v3162_v63 = vld [vmem:[#allocation2 + $0x130] sm:$0x3] }
  0x98   : > { %v1187_v12 = vsel %vm577_vm3, %v1185_v55, %v1186_v48  ;;  %v1429_v54 = vrot.slane %v1313_v62, 2  ;;  %v1547_v56 = vmul.f32 %v2655_v27, %v3144_v50  ;;  %v1430_v23 = vrot.slane %v1314_v59, 2 }
  0x99   : > { %v1023_v13 = vadd.f32 %v991_v32, %v955_v22  ;;  %v1024_v34 = vadd.f32 %v992_v8, %v956_v51  ;;  %v1432_v11 = vrot.slane %v1315_v0, 2  ;;  %v1189_v58 = vsel %vm577_vm3, %v1186_v48, %v1188_v53 }
  0x9a   : > { %v1548_v60 = vmul.f32 %v2655_v27, %v3153_v57  ;;  %v1625_v61 = vmul.f32 %v2665_v33, %v3144_v50  ;;  %v1626_v4 = vmul.f32 %v2665_v33, %v3153_v57  ;;  %v1431_v29 = vsel %vm822_vm4, %v1429_v54, %v1430_v23 }
  0x9b   : > { %v1267_v1 = vadd.f32 %v1187_v12, %v1023_v13  ;;  %v1268_v9 = vadd.f32 %v1189_v58, %v1024_v34  ;;  %v1433_v10 = vsel %vm822_vm4, %v1430_v23, %v1432_v11  ;;  %v1627_v7 = vmul.f32 %v2665_v33, %v3162_v63 }
  0x9c   : > { %v1741_v17 = vrot.slane %v1625_v61, 1  ;;  %v1742_v19 = vrot.slane %v1626_v4, 1  ;;  %v1869_v20 = vmul.f32 %v2693_v5, %v3144_v50  ;;  %v1870_v36 = vmul.f32 %v2693_v5, %v3153_v57 }
  0x9d   : > { %v1511_v24 = vadd.f32 %v1431_v29, %v1267_v1  ;;  %v1512_v32 = vadd.f32 %v1433_v10, %v1268_v9  ;;  %v1871_v37 = vmul.f32 %v2693_v5, %v3162_v63  ;;  %v1744_v39 = vrot.slane %v1627_v7, 1 }
  0x9e   : > { %v1743_v8 = vsel %vm577_vm3, %v1741_v17, %v1742_v19  ;;  %v1985_v49 = vrot.slane %v1869_v20, 2  ;;  %v255_v46 = vmax.f32 %v223_v6, 0.0  ;;  %v1986_v2 = vrot.slane %v1870_v36, 2 }
  0x9f   : > { %v1579_v40 = vadd.f32 %v1547_v56, %v1511_v24  ;;  %v1580_v41 = vadd.f32 %v1548_v60, %v1512_v32  ;;  %v1988_v44 = vrot.slane %v1871_v37, 2  ;;  %v1745_v45 = vsel %vm577_vm3, %v1742_v19, %v1744_v39 }
  0xa0   : > { %v256_v47 = vmax.f32 %v224_v38, 0.0  ;;  %344 = vst.msk [vmem:[#allocation2 + $0x139] sm:$0xff] %vm263_vm1, %v255_v46  ;;  %v435_v55 = vmul.f32 %v2639_v14, %v2931_v30  ;;  %v436_v48 = vmul.f32 %v2639_v14, %v2939_v42  ;;  %v1987_v51 = vsel %vm822_vm4, %v1985_v49, %v1986_v2 }
  0xa1   : > { %v1823_v62 = vadd.f32 %v1743_v8, %v1579_v40  ;;  %v1824_v22 = vadd.f32 %v1745_v45, %v1580_v41  ;;  %v1989_v59 = vsel %vm822_vm4, %v1986_v2, %v1988_v44  ;;  %v514_v0 = vmul.f32 %v2641_v15, %v2931_v30 }
  0xa2   : > { %345 = vst.msk [vmem:[#allocation2 + $0x141] sm:$0xff] %vm263_vm1, %v256_v47  ;;  %v515_v12 = vmul.f32 %v2641_v15, %v2939_v42  ;;  %v516_v53 = vmul.f32 %v2641_v15, %v2947_v52  ;;  %v759_v54 = vmul.f32 %v2644_v16, %v2931_v30  ;;  %v760_v34 = vmul.f32 %v2644_v16, %v2939_v42 }
  0xa3   : > { %v2067_v56 = vadd.f32 %v1987_v51, %v1823_v62  ;;  %v2068_v13 = vadd.f32 %v1989_v59, %v1824_v22  ;;  %v761_v23 = vmul.f32 %v2644_v16, %v2947_v52  ;;  %v633_v11 = vrot.slane %v514_v0, 1 }
  0xa4   : > { %v634_v58 = vrot.slane %v515_v12, 1  ;;  %v636_v60 = vrot.slane %v516_v53, 1  ;;  %v878_v61 = vrot.slane %v759_v54, 2  ;;  %v879_v1 = vrot.slane %v760_v34, 2 }
  0xa5   : > { %v2089_v4 = vpack.c.bf16 %v2068_v13, %v2067_v56  ;;  %v881_v9 = vrot.slane %v761_v23, 2  ;;  %v993_v29 = vmul.f32 %v2647_v21, %v3144_v50  ;;  %v994_v42 = vmul.f32 %v2647_v21, %v3153_v57  ;;  %v209_v13 = vld [vmem:[%s2629_s27 + $0x50] sm:$0xff] }
  0xa6   : > { %v635_v30 = vsel %vm577_vm3, %v633_v11, %v634_v58  ;;  %v637_v10 = vsel %vm577_vm3, %v634_v58, %v636_v60  ;;  %v1072_v52 = vmul.f32 %v2649_v25, %v3144_v50  ;;  %v880_v17 = vsel %vm822_vm4, %v878_v61, %v879_v1 }
  0xa7   : > { %2473 = vmatprep.mubr.msk.bf16.mxu1 %vm263_vm1, %v2089_v4  ;;  %v712_v6 = vadd.f32 %v635_v30, %v435_v55  ;;  %v713_v7 = vadd.f32 %v637_v10, %v436_v48  ;;  %v882_v19 = vsel %vm822_vm4, %v879_v1, %v881_v9  ;;  %v1073_v20 = vmul.f32 %v2649_v25, %v3153_v57  ;;  %v3215_v37 = vld [vmem:[#allocation2 + $0x138] sm:$0xff] }
  0xa8   : > { %v1074_v24 = vmul.f32 %v2649_v25, %v3162_v63  ;;  %v1190_v32 = vrot.slane %v1072_v52, 1  ;;  %v1316_v36 = vmul.f32 %v2652_v26, %v3144_v50  ;;  %v1317_v39 = vmul.f32 %v2652_v26, %v3153_v57  ;;  %v210_v9 = vld [vmem:[%s2629_s27 + $0x58] sm:$0xff] }
  0xa9   : > { %v957_v38 = vadd.f32 %v880_v17, %v712_v6  ;;  %v958_v8 = vadd.f32 %v882_v19, %v713_v7  ;;  %v1318_v49 = vmul.f32 %v2652_v26, %v3162_v63  ;;  %v1191_v46 = vrot.slane %v1073_v20, 1  ;;  %v3223_v44 = vld [vmem:[#allocation2 + $0x140] sm:$0xff]  ;;  %v3231_v0 = vld [vmem:[#allocation2 + $0x148] sm:$0x3] }
  0xaa   : > { %v1193_v40 = vrot.slane %v1074_v24, 1  ;;  %v1434_v41 = vrot.slane %v1316_v36, 2  ;;  %v1549_v2 = vmul.f32 %v2655_v27, %v3215_v37  ;;  %v1435_v55 = vrot.slane %v1317_v39, 2 }
  0xab   : > { %v1025_v45 = vadd.f32 %v993_v29, %v957_v38  ;;  %v1026_v47 = vadd.f32 %v994_v42, %v958_v8  ;;  %v1437_v48 = vrot.slane %v1318_v49, 2  ;;  %v1192_v62 = vsel %vm577_vm3, %v1190_v32, %v1191_v46 }
  0xac   : > { %v1194_v22 = vsel %vm577_vm3, %v1191_v46, %v1193_v40  ;;  %v1550_v51 = vmul.f32 %v2655_v27, %v3223_v44  ;;  %v1628_v59 = vmul.f32 %v2665_v33, %v3215_v37  ;;  %v1436_v54 = vsel %vm822_vm4, %v1434_v41, %v1435_v55 }
  0xad   : > { %v1269_v12 = vadd.f32 %v1192_v62, %v1025_v45  ;;  %v1270_v53 = vadd.f32 %v1194_v22, %v1026_v47  ;;  %v1438_v56 = vsel %vm822_vm4, %v1435_v55, %v1437_v48  ;;  %v1629_v34 = vmul.f32 %v2665_v33, %v3223_v44 }
  0xae   : > { %v1630_v23 = vmul.f32 %v2665_v33, %v3231_v0  ;;  %v1746_v11 = vrot.slane %v1628_v59, 1  ;;  %v1872_v58 = vmul.f32 %v2693_v5, %v3215_v37  ;;  %v1873_v4 = vmul.f32 %v2693_v5, %v3223_v44 }
  0xaf   : > { %v1513_v60 = vadd.f32 %v1436_v54, %v1269_v12  ;;  %v1514_v61 = vadd.f32 %v1438_v56, %v1270_v53  ;;  %v1874_v1 = vmul.f32 %v2693_v5, %v3231_v0  ;;  %v1747_v29 = vrot.slane %v1629_v34, 1 }
  0xb0   : > { %v1749_v30 = vrot.slane %v1630_v23, 1  ;;  %v1990_v10 = vrot.slane %v1872_v58, 2  ;;  %v241_v42 = vmax.f32 %v209_v13, 0.0  ;;  %v1991_v7 = vrot.slane %v1873_v4, 2 }
  0xb1   : > { %v1581_v52 = vadd.f32 %v1549_v2, %v1513_v60  ;;  %v1582_v6 = vadd.f32 %v1550_v51, %v1514_v61  ;;  %v1993_v17 = vrot.slane %v1874_v1, 2  ;;  %v1748_v19 = vsel %vm577_vm3, %v1746_v11, %v1747_v29 }
  0xb2   : > { %v1750_v20 = vsel %vm577_vm3, %v1747_v29, %v1749_v30  ;;  %v242_v24 = vmax.f32 %v210_v9, 0.0  ;;  %330 = vst.msk [vmem:[#allocation2 + $0x91] sm:$0xff] %vm263_vm1, %v241_v42  ;;  %v421_v32 = vmul.f32 %v2639_v14, %v3002_v18  ;;  %v1992_v8 = vsel %vm822_vm4, %v1990_v10, %v1991_v7 }
  0xb3   : > { %v1825_v36 = vadd.f32 %v1748_v19, %v1581_v52  ;;  %v1826_v38 = vadd.f32 %v1750_v20, %v1582_v6  ;;  %v1994_v39 = vsel %vm822_vm4, %v1991_v7, %v1993_v17  ;;  %v422_v49 = vmul.f32 %v2639_v14, %v3011_v31 }
  0xb4   : > { %331 = vst.msk [vmem:[#allocation2 + $0x99] sm:$0xff] %vm263_vm1, %v242_v24  ;;  %v493_v46 = vmul.f32 %v2641_v15, %v3002_v18  ;;  %v494_v40 = vmul.f32 %v2641_v15, %v3011_v31  ;;  %v495_v41 = vmul.f32 %v2641_v15, %v3020_v43  ;;  %v738_v47 = vmul.f32 %v2644_v16, %v3002_v18 }
  0xb5   : > { %v2069_v2 = vadd.f32 %v1992_v8, %v1825_v36  ;;  %v2070_v45 = vadd.f32 %v1994_v39, %v1826_v38  ;;  %v739_v55 = vmul.f32 %v2644_v16, %v3011_v31  ;;  %v740_v51 = vmul.f32 %v2644_v16, %v3020_v43 }
  0xb6   : > { %v598_v48 = vrot.slane %v493_v46, 1  ;;  %v599_v62 = vrot.slane %v494_v40, 1  ;;  %v601_v22 = vrot.slane %v495_v41, 1  ;;  %v843_v12 = vrot.slane %v738_v47, 2 }
  0xb7   : > { %v2090_v59 = vpack.c.bf16 %v2070_v45, %v2069_v2  ;;  %v844_v53 = vrot.slane %v739_v55, 2  ;;  %v979_v54 = vmul.f32 %v2647_v21, %v3073_v35  ;;  %v846_v18 = vrot.slane %v740_v51, 2 }
  0xb8   : > { %v600_v56 = vsel %vm577_vm3, %v598_v48, %v599_v62  ;;  %v602_v13 = vsel %vm577_vm3, %v599_v62, %v601_v22  ;;  %v980_v31 = vmul.f32 %v2647_v21, %v3081_v3  ;;  %v1051_v11 = vmul.f32 %v2649_v25, %v3073_v35  ;;  %v211_v62 = vld [vmem:[%s2629_s27 + $0x60] sm:$0xff] }
  0xb9   : > { %2474 = vmatmul.mubr.msk.bf16.gmra.mrb[4].mxu1 %vm263_vm1, %v2090_v59  ;;  %v698_v34 = vadd.f32 %v600_v56, %v421_v32  ;;  %v699_v23 = vadd.f32 %v602_v13, %v422_v49  ;;  %v845_v43 = vsel %vm822_vm4, %v843_v12, %v844_v53  ;;  %v847_v58 = vsel %vm822_vm4, %v844_v53, %v846_v18  ;;  %v3288_v10 = vld [vmem:[#allocation2 + $0x90] sm:$0xff]  ;;  %v212_v53 = vld [vmem:[%s2629_s27 + $0x68] sm:$0xff] }
  0xba   : > { %v1052_v60 = vmul.f32 %v2649_v25, %v3081_v3  ;;  %v1053_v61 = vmul.f32 %v2649_v25, %v3089_v28  ;;  %v1295_v4 = vmul.f32 %v2652_v26, %v3073_v35  ;;  %v1155_v29 = vrot.slane %v1051_v11, 1 }
  0xbb   : > { %v943_v1 = vadd.f32 %v845_v43, %v698_v34  ;;  %v944_v9 = vadd.f32 %v847_v58, %v699_v23  ;;  %v1296_v30 = vmul.f32 %v2652_v26, %v3081_v3  ;;  %v1297_v6 = vmul.f32 %v2652_v26, %v3089_v28  ;;  %v3292_v17 = vld [vmem:[#allocation2 + $0x98] sm:$0xff]  ;;  %v3300_v49 = vld [vmem:[#allocation2 + $0xa0] sm:$0x3] }
  0xbc   : > { %v1156_v42 = vrot.slane %v1052_v60, 1  ;;  %v1158_v52 = vrot.slane %v1053_v61, 1  ;;  %v1399_v7 = vrot.slane %v1295_v4, 2  ;;  %v1535_v32 = vmul.f32 %v2655_v27, %v3288_v10 }
  0xbd   : > { %v1011_v19 = vadd.f32 %v979_v54, %v943_v1  ;;  %v1012_v20 = vadd.f32 %v980_v31, %v944_v9  ;;  %v1400_v24 = vrot.slane %v1296_v30, 2  ;;  %v1402_v8 = vrot.slane %v1297_v6, 2 }
  0xbe   : > { %v1157_v36 = vsel %vm577_vm3, %v1155_v29, %v1156_v42  ;;  %v1159_v38 = vsel %vm577_vm3, %v1156_v42, %v1158_v52  ;;  %v1536_v39 = vmul.f32 %v2655_v27, %v3292_v17  ;;  %v1607_v2 = vmul.f32 %v2665_v33, %v3288_v10 }
  0xbf   : > { %v1255_v46 = vadd.f32 %v1157_v36, %v1011_v19  ;;  %v1256_v40 = vadd.f32 %v1159_v38, %v1012_v20  ;;  %v1401_v41 = vsel %vm822_vm4, %v1399_v7, %v1400_v24  ;;  %v1403_v45 = vsel %vm822_vm4, %v1400_v24, %v1402_v8 }
  0xc0   : > { %v1608_v47 = vmul.f32 %v2665_v33, %v3292_v17  ;;  %v1609_v55 = vmul.f32 %v2665_v33, %v3300_v49  ;;  %v1851_v48 = vmul.f32 %v2693_v5, %v3288_v10  ;;  %v1711_v59 = vrot.slane %v1607_v2, 1 }
  0xc1   : > { %v1499_v22 = vadd.f32 %v1401_v41, %v1255_v46  ;;  %v1500_v51 = vadd.f32 %v1403_v45, %v1256_v40  ;;  %v1852_v12 = vmul.f32 %v2693_v5, %v3292_v17  ;;  %v1853_v13 = vmul.f32 %v2693_v5, %v3300_v49 }
  0xc2   : > { %v1712_v54 = vrot.slane %v1608_v47, 1  ;;  %v1714_v56 = vrot.slane %v1609_v55, 1  ;;  %v1955_v18 = vrot.slane %v1851_v48, 2  ;;  %v243_v43 = vmax.f32 %v211_v62, 0.0 }
  0xc3   : > { %v1567_v31 = vadd.f32 %v1535_v32, %v1499_v22  ;;  %v1568_v34 = vadd.f32 %v1536_v39, %v1500_v51  ;;  %v1956_v23 = vrot.slane %v1852_v12, 2  ;;  %v1958_v60 = vrot.slane %v1853_v13, 2 }
  0xc4   : > { %v1713_v11 = vsel %vm577_vm3, %v1711_v59, %v1712_v54  ;;  %v1715_v58 = vsel %vm577_vm3, %v1712_v54, %v1714_v56  ;;  %v244_v61 = vmax.f32 %v212_v53, 0.0  ;;  %332 = vst.msk [vmem:[#allocation2 + $0xa9] sm:$0xff] %vm263_vm1, %v243_v43  ;;  %v423_v29 = vmul.f32 %v2639_v14, %v3073_v35 }
  0xc5   : > { %v1811_v4 = vadd.f32 %v1713_v11, %v1567_v31  ;;  %v1812_v1 = vadd.f32 %v1715_v58, %v1568_v34  ;;  %v1957_v9 = vsel %vm822_vm4, %v1955_v18, %v1956_v23  ;;  %v1959_v30 = vsel %vm822_vm4, %v1956_v23, %v1958_v60 }
  0xc6   : > { %333 = vst.msk [vmem:[#allocation2 + $0xb1] sm:$0xff] %vm263_vm1, %v244_v61  ;;  %v424_v42 = vmul.f32 %v2639_v14, %v3081_v3  ;;  %v496_v52 = vmul.f32 %v2641_v15, %v3073_v35  ;;  %v497_v6 = vmul.f32 %v2641_v15, %v3081_v3  ;;  %v498_v20 = vmul.f32 %v2641_v15, %v3089_v28 }
  0xc7   : > { %v2055_v7 = vadd.f32 %v1957_v9, %v1811_v4  ;;  %v2056_v19 = vadd.f32 %v1959_v30, %v1812_v1  ;;  %v741_v24 = vmul.f32 %v2644_v16, %v3073_v35  ;;  %v742_v38 = vmul.f32 %v2644_v16, %v3081_v3 }
  0xc8   : > { %v603_v32 = vrot.slane %v496_v52, 1  ;;  %v604_v36 = vrot.slane %v497_v6, 1  ;;  %v743_v8 = vmul.f32 %v2644_v16, %v3089_v28  ;;  %v606_v46 = vrot.slane %v498_v20, 1 }
  0xc9   : > { %v2083_v39 = vpack.c.bf16 %v2056_v19, %v2055_v7  ;;  %v848_v40 = vrot.slane %v741_v24, 2  ;;  %v981_v41 = vmul.f32 %v2647_v21, %v3288_v10  ;;  %v849_v45 = vrot.slane %v742_v38, 2 }
  0xca   : > { %v605_v2 = vsel %vm577_vm3, %v603_v32, %v604_v36  ;;  %v851_v47 = vrot.slane %v743_v8, 2  ;;  %v982_v35 = vmul.f32 %v2647_v21, %v3292_v17  ;;  %v607_v3 = vsel %vm577_vm3, %v604_v36, %v606_v46  ;;  %v225_v36 = vld [vmem:[%s2629_s27 + $0xd0] sm:$0xff] }
  0xcb   : > { %2461 = vmatprep.mubr.msk.bf16.mxu0 %vm263_vm1, %v2083_v39  ;;  %v700_v55 = vadd.f32 %v605_v2, %v423_v29  ;;  %v1054_v28 = vmul.f32 %v2649_v25, %v3288_v10  ;;  %v1055_v48 = vmul.f32 %v2649_v25, %v3292_v17  ;;  %v701_v62 = vadd.f32 %v607_v3, %v424_v42  ;;  %v3357_v13 = vld [vmem:[#allocation2 + $0xa8] sm:$0xff] }
  0xcc   : > { %v850_v22 = vsel %vm822_vm4, %v848_v40, %v849_v45  ;;  %v852_v51 = vsel %vm822_vm4, %v849_v45, %v851_v47  ;;  %v1056_v59 = vmul.f32 %v2649_v25, %v3300_v49  ;;  %v1298_v56 = vmul.f32 %v2652_v26, %v3288_v10  ;;  %v226_v47 = vld [vmem:[%s2629_s27 + $0xd8] sm:$0xff] }
  0xcd   : > { %v945_v12 = vadd.f32 %v850_v22, %v700_v55  ;;  %v1160_v53 = vrot.slane %v1054_v28, 1  ;;  %v1161_v54 = vrot.slane %v1055_v48, 1  ;;  %v946_v18 = vadd.f32 %v852_v51, %v701_v62  ;;  %v3366_v61 = vld [vmem:[#allocation2 + $0xb0] sm:$0xff]  ;;  %v3369_v30 = vld [vmem:[#allocation2 + $0xb8] sm:$0x3] }
  0xce   : > { %v1163_v31 = vrot.slane %v1056_v59, 1  ;;  %v1299_v34 = vmul.f32 %v2652_v26, %v3292_v17  ;;  %v1300_v23 = vmul.f32 %v2652_v26, %v3300_v49  ;;  %v1404_v58 = vrot.slane %v1298_v56, 2 }
  0xcf   : > { %v1013_v43 = vadd.f32 %v981_v41, %v945_v12  ;;  %v1162_v11 = vsel %vm577_vm3, %v1160_v53, %v1161_v54  ;;  %v1537_v60 = vmul.f32 %v2655_v27, %v3357_v13  ;;  %v1014_v4 = vadd.f32 %v982_v35, %v946_v18 }
  0xd0   : > { %v1164_v1 = vsel %vm577_vm3, %v1161_v54, %v1163_v31  ;;  %v1405_v9 = vrot.slane %v1299_v34, 2  ;;  %v1407_v29 = vrot.slane %v1300_v23, 2  ;;  %v1538_v52 = vmul.f32 %v2655_v27, %v3366_v61 }
  0xd1   : > { %v1257_v42 = vadd.f32 %v1162_v11, %v1013_v43  ;;  %v1610_v6 = vmul.f32 %v2665_v33, %v3357_v13  ;;  %v1611_v7 = vmul.f32 %v2665_v33, %v3366_v61  ;;  %v1258_v19 = vadd.f32 %v1164_v1, %v1014_v4 }
  0xd2   : > { %v1406_v20 = vsel %vm822_vm4, %v1404_v58, %v1405_v9  ;;  %v1408_v24 = vsel %vm822_vm4, %v1405_v9, %v1407_v29  ;;  %v1612_v32 = vmul.f32 %v2665_v33, %v3369_v30  ;;  %v1854_v46 = vmul.f32 %v2693_v5, %v3357_v13 }
  0xd3   : > { %v1501_v38 = vadd.f32 %v1406_v20, %v1257_v42  ;;  %v1716_v8 = vrot.slane %v1610_v6, 1  ;;  %v1717_v39 = vrot.slane %v1611_v7, 1  ;;  %v1502_v40 = vadd.f32 %v1408_v24, %v1258_v19 }
  0xd4   : > { %v1719_v41 = vrot.slane %v1612_v32, 1  ;;  %v1855_v2 = vmul.f32 %v2693_v5, %v3366_v61  ;;  %v1856_v45 = vmul.f32 %v2693_v5, %v3369_v30  ;;  %v1960_v55 = vrot.slane %v1854_v46, 2 }
  0xd5   : > { %v1569_v35 = vadd.f32 %v1537_v60, %v1501_v38  ;;  %v1718_v3 = vsel %vm577_vm3, %v1716_v8, %v1717_v39  ;;  %v257_v28 = vmax.f32 %v225_v36, 0.0  ;;  %v1570_v48 = vadd.f32 %v1538_v52, %v1502_v40 }
  0xd6   : > { %v1720_v62 = vsel %vm577_vm3, %v1717_v39, %v1719_v41  ;;  %v1961_v22 = vrot.slane %v1855_v2, 2  ;;  %v1963_v51 = vrot.slane %v1856_v45, 2  ;;  %v258_v12 = vmax.f32 %v226_v47, 0.0 }
  0xd7   : > { %v1813_v59 = vadd.f32 %v1718_v3, %v1569_v35  ;;  %346 = vst.msk [vmem:[#allocation2 + $0x151] sm:$0xff] %vm263_vm1, %v257_v28  ;;  %v437_v53 = vmul.f32 %v2639_v14, %v3144_v50  ;;  %v438_v54 = vmul.f32 %v2639_v14, %v3153_v57  ;;  %v1814_v56 = vadd.f32 %v1720_v62, %v1570_v48 }
  0xd8   : > { %v1962_v18 = vsel %vm822_vm4, %v1960_v55, %v1961_v22  ;;  %v1964_v31 = vsel %vm822_vm4, %v1961_v22, %v1963_v51  ;;  %v517_v34 = vmul.f32 %v2641_v15, %v3144_v50  ;;  %347 = vst.msk [vmem:[#allocation2 + $0x159] sm:$0xff] %vm263_vm1, %v258_v12  ;;  %v518_v43 = vmul.f32 %v2641_v15, %v3153_v57 }
  0xd9   : > { %v2057_v23 = vadd.f32 %v1962_v18, %v1813_v59  ;;  %v519_v11 = vmul.f32 %v2641_v15, %v3162_v63  ;;  %v762_v58 = vmul.f32 %v2644_v16, %v3144_v50  ;;  %v2058_v60 = vadd.f32 %v1964_v31, %v1814_v56 }
  0xda   : > { %v638_v4 = vrot.slane %v517_v34, 1  ;;  %v763_v1 = vmul.f32 %v2644_v16, %v3153_v57  ;;  %v764_v9 = vmul.f32 %v2644_v16, %v3162_v63  ;;  %v639_v29 = vrot.slane %v518_v43, 1 }
  0xdb   : > { %v641_v42 = vrot.slane %v519_v11, 1  ;;  %v883_v52 = vrot.slane %v762_v58, 2  ;;  %v995_v6 = vmul.f32 %v2647_v21, %v3215_v37  ;;  %v2084_v7 = vpack.c.bf16 %v2058_v60, %v2057_v23 }
  0xdc   : > { %v884_v19 = vrot.slane %v763_v1, 2  ;;  %v886_v20 = vrot.slane %v764_v9, 2  ;;  %v996_v50 = vmul.f32 %v2647_v21, %v3223_v44  ;;  %v640_v24 = vsel %vm577_vm3, %v638_v4, %v639_v29  ;;  %v227_v4 = vld [vmem:[%s2629_s27 + $0xe0] sm:$0xff] }
  0xdd   : > { %v642_v32 = vsel %vm577_vm3, %v639_v29, %v641_v42  ;;  %v1075_v57 = vmul.f32 %v2649_v25, %v3215_v37  ;;  %v1076_v63 = vmul.f32 %v2649_v25, %v3223_v44  ;;  %2462 = vmatmul.mubr.msk.bf16.gmra.mrb[8].mxu0 %vm263_vm1, %v2084_v7  ;;  %v714_v36 = vadd.f32 %v640_v24, %v437_v53 }
  0xde   : > { %v715_v38 = vadd.f32 %v642_v32, %v438_v54  ;;  %v885_v8 = vsel %vm822_vm4, %v883_v52, %v884_v19  ;;  %v887_v39 = vsel %vm822_vm4, %v884_v19, %v886_v20  ;;  %v1077_v46 = vmul.f32 %v2649_v25, %v3231_v0  ;;  %v3428_v45 = vld [vmem:[#allocation2 + $0x150] sm:$0xff]  ;;  %v228_v20 = vld [vmem:[%s2629_s27 + $0xe8] sm:$0xff] }
  0xdf   : > { %v1195_v40 = vrot.slane %v1075_v57, 1  ;;  %v1196_v41 = vrot.slane %v1076_v63, 1  ;;  %v1319_v2 = vmul.f32 %v2652_v26, %v3215_v37  ;;  %v959_v47 = vadd.f32 %v885_v8, %v714_v36  ;;  %v3437_v51 = vld [vmem:[#allocation2 + $0x158] sm:$0xff]  ;;  %v3446_v23 = vld [vmem:[#allocation2 + $0x160] sm:$0x3] }
  0xe0   : > { %v960_v35 = vadd.f32 %v887_v39, %v715_v38  ;;  %v1320_v3 = vmul.f32 %v2652_v26, %v3223_v44  ;;  %v1321_v55 = vmul.f32 %v2652_v26, %v3231_v0  ;;  %v1198_v48 = vrot.slane %v1077_v46, 1 }
  0xe1   : > { %v1197_v28 = vsel %vm577_vm3, %v1195_v40, %v1196_v41  ;;  %v1439_v62 = vrot.slane %v1319_v2, 2  ;;  %v1551_v22 = vmul.f32 %v2655_v27, %v3428_v45  ;;  %v1027_v59 = vadd.f32 %v995_v6, %v959_v47 }
  0xe2   : > { %v1028_v12 = vadd.f32 %v996_v50, %v960_v35  ;;  %v1440_v53 = vrot.slane %v1320_v3, 2  ;;  %v1442_v54 = vrot.slane %v1321_v55, 2  ;;  %v1199_v56 = vsel %vm577_vm3, %v1196_v41, %v1198_v48 }
  0xe3   : > { %v1552_v18 = vmul.f32 %v2655_v27, %v3437_v51  ;;  %v1631_v31 = vmul.f32 %v2665_v33, %v3428_v45  ;;  %v1632_v34 = vmul.f32 %v2665_v33, %v3437_v51  ;;  %v1271_v43 = vadd.f32 %v1197_v28, %v1027_v59 }
  0xe4   : > { %v1272_v11 = vadd.f32 %v1199_v56, %v1028_v12  ;;  %v1441_v58 = vsel %vm822_vm4, %v1439_v62, %v1440_v53  ;;  %v1443_v60 = vsel %vm822_vm4, %v1440_v53, %v1442_v54  ;;  %v1633_v1 = vmul.f32 %v2665_v33, %v3446_v23 }
  0xe5   : > { %v1751_v9 = vrot.slane %v1631_v31, 1  ;;  %v1752_v29 = vrot.slane %v1632_v34, 1  ;;  %v1875_v42 = vmul.f32 %v2693_v5, %v3428_v45  ;;  %v1515_v52 = vadd.f32 %v1441_v58, %v1271_v43 }
  0xe6   : > { %v1516_v6 = vadd.f32 %v1443_v60, %v1272_v11  ;;  %v1876_v7 = vmul.f32 %v2693_v5, %v3437_v51  ;;  %v1877_v19 = vmul.f32 %v2693_v5, %v3446_v23  ;;  %v1754_v24 = vrot.slane %v1633_v1, 1 }
  0xe7   : > { %v1753_v50 = vsel %vm577_vm3, %v1751_v9, %v1752_v29  ;;  %v1995_v32 = vrot.slane %v1875_v42, 2  ;;  %v259_v57 = vmax.f32 %v227_v4, 0.0  ;;  %v1583_v63 = vadd.f32 %v1551_v22, %v1515_v52 }
  0xe8   : > { %v1584_v36 = vadd.f32 %v1552_v18, %v1516_v6  ;;  %v1996_v38 = vrot.slane %v1876_v7, 2  ;;  %v1998_v8 = vrot.slane %v1877_v19, 2  ;;  %v1755_v39 = vsel %vm577_vm3, %v1752_v29, %v1754_v24 }
  0xe9   : > { %v260_v46 = vmax.f32 %v228_v20, 0.0  ;;  %348 = vst.msk [vmem:[#allocation2 + $0x169] sm:$0xff] %vm263_vm1, %v259_v57  ;;  %v439_v40 = vmul.f32 %v2639_v14, %v3215_v37  ;;  %v440_v41 = vmul.f32 %v2639_v14, %v3223_v44  ;;  %v1827_v2 = vadd.f32 %v1753_v50, %v1583_v63 }
  0xea   : > { %v1828_v47 = vadd.f32 %v1755_v39, %v1584_v36  ;;  %v1997_v35 = vsel %vm822_vm4, %v1995_v32, %v1996_v38  ;;  %v1999_v3 = vsel %vm822_vm4, %v1996_v38, %v1998_v8  ;;  %v520_v55 = vmul.f32 %v2641_v15, %v3215_v37 }
  0xeb   : > { %349 = vst.msk [vmem:[#allocation2 + $0x171] sm:$0xff] %vm263_vm1, %v260_v46  ;;  %v521_v28 = vmul.f32 %v2641_v15, %v3223_v44  ;;  %v522_v48 = vmul.f32 %v2641_v15, %v3231_v0  ;;  %v765_v62 = vmul.f32 %v2644_v16, %v3215_v37  ;;  %v2071_v22 = vadd.f32 %v1997_v35, %v1827_v2 }
  0xec   : > { %v2072_v59 = vadd.f32 %v1999_v3, %v1828_v47  ;;  %v766_v12 = vmul.f32 %v2644_v16, %v3223_v44  ;;  %v767_v53 = vmul.f32 %v2644_v16, %v3231_v0  ;;  %v643_v54 = vrot.slane %v520_v55, 1 }
  0xed   : > { %v644_v56 = vrot.slane %v521_v28, 1  ;;  %v646_v18 = vrot.slane %v522_v48, 1  ;;  %v888_v31 = vrot.slane %v765_v62, 2  ;;  %v997_v58 = vmul.f32 %v2647_v21, %v3428_v45 }
  0xee   : > { %v2091_v34 = vpack.c.bf16 %v2072_v59, %v2071_v22  ;;  %v889_v43 = vrot.slane %v766_v12, 2  ;;  %v891_v11 = vrot.slane %v767_v53, 2  ;;  %v998_v44 = vmul.f32 %v2647_v21, %v3437_v51 }
  0xef   : > { %v645_v37 = vsel %vm577_vm3, %v643_v54, %v644_v56  ;;  %v647_v60 = vsel %vm577_vm3, %v644_v56, %v646_v18  ;;  %v1078_v0 = vmul.f32 %v2649_v25, %v3428_v45  ;;  %v1079_v42 = vmul.f32 %v2649_v25, %v3437_v51 }
  0xf0   : > { %2477 = vmatprep.mubr.msk.bf16.mxu1 %vm263_vm1, %v2091_v34  ;;  %v716_v4 = vadd.f32 %v645_v37, %v439_v40  ;;  %v717_v1 = vadd.f32 %v647_v60, %v440_v41  ;;  %v890_v9 = vsel %vm822_vm4, %v888_v31, %v889_v43  ;;  %v892_v29 = vsel %vm822_vm4, %v889_v43, %v891_v11  ;;  %v3499_v19 = vld [vmem:[#allocation2 + $0x168] sm:$0xff] }
  0xf1   : > { %v1080_v52 = vmul.f32 %v2649_v25, %v3446_v23  ;;  %v1200_v6 = vrot.slane %v1078_v0, 1  ;;  %v1322_v7 = vmul.f32 %v2652_v26, %v3428_v45  ;;  %v1323_v24 = vmul.f32 %v2652_v26, %v3437_v51 }
  0xf2   : > { %v961_v20 = vadd.f32 %v890_v9, %v716_v4  ;;  %v962_v50 = vadd.f32 %v892_v29, %v717_v1  ;;  %v1324_v32 = vmul.f32 %v2652_v26, %v3446_v23  ;;  %v1201_v57 = vrot.slane %v1079_v42, 1  ;;  %v3507_v8 = vld [vmem:[#allocation2 + $0x170] sm:$0xff]  ;;  %v3515_v55 = vld [vmem:[#allocation2 + $0x178] sm:$0x3] }
  0xf3   : > { %v1203_v63 = vrot.slane %v1080_v52, 1  ;;  %v1444_v36 = vrot.slane %v1322_v7, 2  ;;  %v1553_v38 = vmul.f32 %v2655_v27, %v3499_v19  ;;  %v1445_v40 = vrot.slane %v1323_v24, 2 }
  0xf4   : > { %v1029_v39 = vadd.f32 %v997_v58, %v961_v20  ;;  %v1030_v46 = vadd.f32 %v998_v44, %v962_v50  ;;  %v1447_v41 = vrot.slane %v1324_v32, 2  ;;  %v1202_v2 = vsel %vm577_vm3, %v1200_v6, %v1201_v57 }
  0xf5   : > { %v1204_v47 = vsel %vm577_vm3, %v1201_v57, %v1203_v63  ;;  %v1554_v35 = vmul.f32 %v2655_v27, %v3507_v8  ;;  %v1634_v3 = vmul.f32 %v2665_v33, %v3499_v19  ;;  %v1446_v62 = vsel %vm822_vm4, %v1444_v36, %v1445_v40 }
  0xf6   : > { %v1273_v28 = vadd.f32 %v1202_v2, %v1029_v39  ;;  %v1274_v48 = vadd.f32 %v1204_v47, %v1030_v46  ;;  %v1448_v22 = vsel %vm822_vm4, %v1445_v40, %v1447_v41  ;;  %v1635_v59 = vmul.f32 %v2665_v33, %v3507_v8 }
  0xf7   : > { %v1636_v12 = vmul.f32 %v2665_v33, %v3515_v55  ;;  %v1756_v53 = vrot.slane %v1634_v3, 1  ;;  %v1878_v54 = vmul.f32 %v2693_v5, %v3499_v19  ;;  %v1879_v31 = vmul.f32 %v2693_v5, %v3507_v8 }
  0xf8   : > { %v1517_v56 = vadd.f32 %v1446_v62, %v1273_v28  ;;  %v1518_v18 = vadd.f32 %v1448_v22, %v1274_v48  ;;  %v1880_v34 = vmul.f32 %v2693_v5, %v3515_v55  ;;  %v1757_v43 = vrot.slane %v1635_v59, 1 }
  0xf9   : > { %v1759_v11 = vrot.slane %v1636_v12, 1  ;;  %v2000_v58 = vrot.slane %v1878_v54, 2  ;;  %v425_v37 = vmul.f32 %v2639_v14, %v3288_v10  ;;  %v2001_v0 = vrot.slane %v1879_v31, 2 }
  0xfa   : > { %v1585_v60 = vadd.f32 %v1553_v38, %v1517_v56  ;;  %v1586_v44 = vadd.f32 %v1554_v35, %v1518_v18  ;;  %v2003_v4 = vrot.slane %v1880_v34, 2  ;;  %v1758_v1 = vsel %vm577_vm3, %v1756_v53, %v1757_v43 }
  0xfb   : > { %v1760_v9 = vsel %vm577_vm3, %v1757_v43, %v1759_v11  ;;  %v426_v29 = vmul.f32 %v2639_v14, %v3292_v17  ;;  %v499_v42 = vmul.f32 %v2641_v15, %v3288_v10  ;;  %v2002_v7 = vsel %vm822_vm4, %v2000_v58, %v2001_v0 }
  0xfc   : > { %v1829_v52 = vadd.f32 %v1758_v1, %v1585_v60  ;;  %v1830_v6 = vadd.f32 %v1760_v9, %v1586_v44  ;;  %v2004_v20 = vsel %vm822_vm4, %v2001_v0, %v2003_v4  ;;  %v500_v50 = vmul.f32 %v2641_v15, %v3292_v17  ;;  %v3571_v44 = vld [vmem:[#allocation2 + $0xc0] sm:$0xff] }
  0xfd   : > { %v501_v24 = vmul.f32 %v2641_v15, %v3300_v49  ;;  %v608_v32 = vrot.slane %v499_v42, 1  ;;  %v744_v57 = vmul.f32 %v2644_v16, %v3288_v10  ;;  %v745_v38 = vmul.f32 %v2644_v16, %v3292_v17 }
  0xfe   : > { %v2073_v63 = vadd.f32 %v2002_v7, %v1829_v52  ;;  %v2074_v36 = vadd.f32 %v2004_v20, %v1830_v6  ;;  %v746_v39 = vmul.f32 %v2644_v16, %v3300_v49  ;;  %v609_v46 = vrot.slane %v500_v50, 1  ;;  %v3576_v52 = vld [vmem:[#allocation2 + $0xc8] sm:$0xff] }
  0xff   : > { %v611_v40 = vrot.slane %v501_v24, 1  ;;  %v853_v41 = vrot.slane %v744_v57, 2  ;;  %v983_v2 = vmul.f32 %v2647_v21, %v3357_v13  ;;  %v854_v35 = vrot.slane %v745_v38, 2 }
 0x100   : > { %v2092_v47 = vpack.c.bf16 %v2074_v36, %v2073_v63  ;;  %v856_v3 = vrot.slane %v746_v39, 2  ;;  %v984_v10 = vmul.f32 %v2647_v21, %v3366_v61  ;;  %v610_v28 = vsel %vm577_vm3, %v608_v32, %v609_v46  ;;  %v2500_v63 = vld [vmem:[#allocation2 + $0xd0] sm:$0x3] }
 0x101   : > { %v612_v48 = vsel %vm577_vm3, %v609_v46, %v611_v40  ;;  %v1057_v17 = vmul.f32 %v2649_v25, %v3357_v13  ;;  %v1058_v49 = vmul.f32 %v2649_v25, %v3366_v61  ;;  %v702_v62 = vadd.f32 %v610_v28, %v425_v37 }
 0x102   : > { %2478 = vmatmul.mubr.msk.bf16.gmra.mrb[8].mxu1 %vm263_vm1, %v2092_v47  ;;  %v703_v22 = vadd.f32 %v612_v48, %v426_v29  ;;  %v855_v59 = vsel %vm822_vm4, %v853_v41, %v854_v35  ;;  %v857_v12 = vsel %vm822_vm4, %v854_v35, %v856_v3  ;;  %v1059_v53 = vmul.f32 %v2649_v25, %v3369_v30 }
 0x103   : > { %v1165_v54 = vrot.slane %v1057_v17, 1  ;;  %v1166_v56 = vrot.slane %v1058_v49, 1  ;;  %v1301_v18 = vmul.f32 %v2652_v26, %v3357_v13  ;;  %v947_v31 = vadd.f32 %v855_v59, %v702_v62 }
 0x104   : > { %v948_v34 = vadd.f32 %v857_v12, %v703_v22  ;;  %v1302_v43 = vmul.f32 %v2652_v26, %v3366_v61  ;;  %v1303_v11 = vmul.f32 %v2652_v26, %v3369_v30  ;;  %v1168_v37 = vrot.slane %v1059_v53, 1 }
 0x105   : > { %v1167_v58 = vsel %vm577_vm3, %v1165_v54, %v1166_v56  ;;  %v1409_v60 = vrot.slane %v1301_v18, 2  ;;  %v1539_v0 = vmul.f32 %v3571_v44, %v2655_v27  ;;  %v1015_v4 = vadd.f32 %v983_v2, %v947_v31 }
 0x106   : > { %v1016_v1 = vadd.f32 %v984_v10, %v948_v34  ;;  %v1410_v9 = vrot.slane %v1302_v43, 2  ;;  %v1412_v29 = vrot.slane %v1303_v11, 2  ;;  %v1169_v42 = vsel %vm577_vm3, %v1166_v56, %v1168_v37 }
 0x107   : > { %v1540_v6 = vmul.f32 %v3576_v52, %v2655_v27  ;;  %v1613_v7 = vmul.f32 %v3571_v44, %v2665_v33  ;;  %v1614_v20 = vmul.f32 %v3576_v52, %v2665_v33  ;;  %v1259_v50 = vadd.f32 %v1167_v58, %v1015_v4 }
 0x108   : > { %v1260_v24 = vadd.f32 %v1169_v42, %v1016_v1  ;;  %v1411_v32 = vsel %vm822_vm4, %v1409_v60, %v1410_v9  ;;  %v1413_v57 = vsel %vm822_vm4, %v1410_v9, %v1412_v29  ;;  %v1615_v36 = vmul.f32 %v2500_v63, %v2665_v33 }
 0x109   : > { %v1721_v38 = vrot.slane %v1613_v7, 1  ;;  %v1722_v39 = vrot.slane %v1614_v20, 1  ;;  %v1857_v46 = vmul.f32 %v3571_v44, %v2693_v5  ;;  %v1503_v40 = vadd.f32 %v1411_v32, %v1259_v50 }
 0x10a   : > { %v1504_v41 = vadd.f32 %v1413_v57, %v1260_v24  ;;  %v1858_v2 = vmul.f32 %v3576_v52, %v2693_v5  ;;  %v1859_v47 = vmul.f32 %v2500_v63, %v2693_v5  ;;  %v1724_v3 = vrot.slane %v1615_v36, 1 }
 0x10b   : > { %v1723_v35 = vsel %vm577_vm3, %v1721_v38, %v1722_v39  ;;  %v1965_v10 = vrot.slane %v1857_v46, 2  ;;  %v427_v28 = vmul.f32 %v2639_v14, %v3357_v13  ;;  %v1571_v48 = vadd.f32 %v1539_v0, %v1503_v40 }
 0x10c   : > { %v1572_v17 = vadd.f32 %v1540_v6, %v1504_v41  ;;  %v1966_v49 = vrot.slane %v1858_v2, 2  ;;  %v1968_v62 = vrot.slane %v1859_v47, 2  ;;  %v1725_v22 = vsel %vm577_vm3, %v1722_v39, %v1724_v3 }
 0x10d   : > { %v428_v59 = vmul.f32 %v2639_v14, %v3366_v61  ;;  %v502_v12 = vmul.f32 %v2641_v15, %v3357_v13  ;;  %v503_v53 = vmul.f32 %v2641_v15, %v3366_v61  ;;  %v1815_v54 = vadd.f32 %v1723_v35, %v1571_v48 }
 0x10e   : > { %v1816_v56 = vadd.f32 %v1725_v22, %v1572_v17  ;;  %v1967_v18 = vsel %vm822_vm4, %v1965_v10, %v1966_v49  ;;  %v1969_v31 = vsel %vm822_vm4, %v1966_v49, %v1968_v62  ;;  %v504_v34 = vmul.f32 %v2641_v15, %v3369_v30  ;;  %v2501_v17 = vld [vmem:[#allocation2 + $0xd8] sm:$0xff] }
 0x10f   : > { %v613_v43 = vrot.slane %v502_v12, 1  ;;  %v614_v11 = vrot.slane %v503_v53, 1  ;;  %v747_v58 = vmul.f32 %v2644_v16, %v3357_v13  ;;  %v2059_v37 = vadd.f32 %v1967_v18, %v1815_v54  ;;  %v2502_v53 = vld [vmem:[#allocation2 + $0xe0] sm:$0xff] }
 0x110   : > { %v2060_v60 = vadd.f32 %v1969_v31, %v1816_v56  ;;  %v748_v0 = vmul.f32 %v2644_v16, %v3366_v61  ;;  %v749_v4 = vmul.f32 %v2644_v16, %v3369_v30  ;;  %v616_v9 = vrot.slane %v504_v34, 1  ;;  %v2503_v34 = vld [vmem:[#allocation2 + $0xe8] sm:$0x3] }
 0x111   : > { %v615_v1 = vsel %vm577_vm3, %v613_v43, %v614_v11  ;;  %v858_v29 = vrot.slane %v747_v58, 2  ;;  %v985_v42 = vmul.f32 %v3571_v44, %v2647_v21  ;;  %v986_v24 = vmul.f32 %v3576_v52, %v2647_v21 }
 0x112   : > { %v2085_v6 = vpack.c.bf16 %v2060_v60, %v2059_v37  ;;  %v704_v7 = vadd.f32 %v615_v1, %v427_v28  ;;  %v859_v20 = vrot.slane %v748_v0, 2  ;;  %v861_v50 = vrot.slane %v749_v4, 2 }
 0x113   : > { %v617_v13 = vsel %vm577_vm3, %v614_v11, %v616_v9  ;;  %v1060_v61 = vmul.f32 %v3571_v44, %v2649_v25  ;;  %v1061_v30 = vmul.f32 %v3576_v52, %v2649_v25  ;;  %v1062_v38 = vmul.f32 %v2500_v63, %v2649_v25  ;;  %v229_v11 = vld [vmem:[%s2629_s27 + $0xf0] sm:$0xff] }
 0x114   : > { %2465 = vmatprep.mubr.msk.bf16.mxu0 %vm263_vm1, %v2085_v6  ;;  %v705_v32 = vadd.f32 %v617_v13, %v428_v59  ;;  %v860_v57 = vsel %vm822_vm4, %v858_v29, %v859_v20  ;;  %v862_v36 = vsel %vm822_vm4, %v859_v20, %v861_v50  ;;  %v1304_v41 = vmul.f32 %v3571_v44, %v2652_v26 }
 0x115   : > { %v949_v39 = vadd.f32 %v860_v57, %v704_v7  ;;  %v1170_v46 = vrot.slane %v1060_v61, 1  ;;  %v1171_v40 = vrot.slane %v1061_v30, 1  ;;  %v1173_v47 = vrot.slane %v1062_v38, 1 }
 0x116   : > { %v950_v2 = vadd.f32 %v862_v36, %v705_v32  ;;  %v1305_v35 = vmul.f32 %v3576_v52, %v2652_v26  ;;  %v1306_v3 = vmul.f32 %v2500_v63, %v2652_v26  ;;  %v1414_v48 = vrot.slane %v1304_v41, 2 }
 0x117   : > { %v1017_v10 = vadd.f32 %v985_v42, %v949_v39  ;;  %v1172_v28 = vsel %vm577_vm3, %v1170_v46, %v1171_v40  ;;  %v1541_v49 = vmul.f32 %v2501_v17, %v2655_v27  ;;  %v1174_v22 = vsel %vm577_vm3, %v1171_v40, %v1173_v47  ;;  %v230_v42 = vld [vmem:[%s2629_s27 + $0xf8] sm:$0xff] }
 0x118   : > { %v1018_v62 = vadd.f32 %v986_v24, %v950_v2  ;;  %v1415_v59 = vrot.slane %v1305_v35, 2  ;;  %v1417_v44 = vrot.slane %v1306_v3, 2  ;;  %v1542_v54 = vmul.f32 %v2502_v53, %v2655_v27 }
 0x119   : > { %v1261_v12 = vadd.f32 %v1172_v28, %v1017_v10  ;;  %v1616_v52 = vmul.f32 %v2501_v17, %v2665_v33  ;;  %v1617_v63 = vmul.f32 %v2502_v53, %v2665_v33  ;;  %v1618_v43 = vmul.f32 %v2503_v34, %v2665_v33 }
 0x11a   : > { %v1262_v56 = vadd.f32 %v1174_v22, %v1018_v62  ;;  %v1416_v18 = vsel %vm822_vm4, %v1414_v48, %v1415_v59  ;;  %v1418_v31 = vsel %vm822_vm4, %v1415_v59, %v1417_v44  ;;  %v1860_v0 = vmul.f32 %v2501_v17, %v2693_v5 }
 0x11b   : > { %v1505_v58 = vadd.f32 %v1416_v18, %v1261_v12  ;;  %v1726_v37 = vrot.slane %v1616_v52, 1  ;;  %v1727_v60 = vrot.slane %v1617_v63, 1  ;;  %v1729_v1 = vrot.slane %v1618_v43, 1 }
 0x11c   : > { %v1506_v4 = vadd.f32 %v1418_v31, %v1262_v56  ;;  %v1861_v9 = vmul.f32 %v2502_v53, %v2693_v5  ;;  %v1862_v29 = vmul.f32 %v2503_v34, %v2693_v5  ;;  %v1970_v20 = vrot.slane %v1860_v0, 2 }
 0x11d   : > { %v1573_v6 = vadd.f32 %v1541_v49, %v1505_v58  ;;  %v1728_v7 = vsel %vm577_vm3, %v1726_v37, %v1727_v60  ;;  %v261_v50 = vmax.f32 %v229_v11, 0.0  ;;  %v1730_v24 = vsel %vm577_vm3, %v1727_v60, %v1729_v1 }
 0x11e   : > { %v1574_v13 = vadd.f32 %v1542_v54, %v1506_v4  ;;  %v1971_v61 = vrot.slane %v1861_v9, 2  ;;  %v1973_v30 = vrot.slane %v1862_v29, 2  ;;  %v262_v57 = vmax.f32 %v230_v42, 0.0 }
 0x11f   : > { %v1817_v32 = vadd.f32 %v1728_v7, %v1573_v6  ;;  %350 = vst.msk [vmem:[#allocation2 + $0x181] sm:$0xff] %vm263_vm1, %v261_v50  ;;  %v441_v36 = vmul.f32 %v2639_v14, %v3428_v45  ;;  %v442_v38 = vmul.f32 %v2639_v14, %v3437_v51  ;;  %v523_v41 = vmul.f32 %v2641_v15, %v3428_v45 }
 0x120   : > { %v1818_v39 = vadd.f32 %v1730_v24, %v1574_v13  ;;  %v1972_v46 = vsel %vm822_vm4, %v1970_v20, %v1971_v61  ;;  %v1974_v40 = vsel %vm822_vm4, %v1971_v61, %v1973_v30  ;;  %v3656_v2 = vpop.f32.mrb[0].mxu0  ;;  %351 = vst.msk [vmem:[#allocation2 + $0x189] sm:$0xff] %vm263_vm1, %v262_v57  ;;  %v524_v35 = vmul.f32 %v2641_v15, %v3437_v51 }
 0x121   : > { %v2061_v47 = vadd.f32 %v1972_v46, %v1817_v32  ;;  %v525_v3 = vmul.f32 %v2641_v15, %v3446_v23  ;;  %v768_v10 = vmul.f32 %v2644_v16, %v3428_v45  ;;  %v3665_v28 = vpop.f32.mrb[1].mxu0  ;;  %v648_v17 = vrot.slane %v523_v41, 1 }
 0x122   : > { %v2062_v48 = vadd.f32 %v1974_v40, %v1818_v39  ;;  %v769_v49 = vmul.f32 %v2644_v16, %v3437_v51  ;;  %v770_v62 = vmul.f32 %v2644_v16, %v3446_v23  ;;  %v3671_v22 = vpop.f32.mrb[2].mxu0  ;;  %v649_v59 = vrot.slane %v524_v35, 1 }
 0x123   : > { %v651_v44 = vrot.slane %v525_v3, 1  ;;  %v893_v12 = vrot.slane %v768_v10, 2  ;;  %v999_v53 = vmul.f32 %v2647_v21, %v3499_v19  ;;  %v3675_v54 = vpop.f32.mrb[3].mxu0  ;;  %v1000_v56 = vmul.f32 %v2647_v21, %v3507_v8 }
 0x124   : > { %v2086_v45 = vpack.c.bf16 %v2062_v48, %v2061_v47  ;;  %v894_v52 = vrot.slane %v769_v49, 2  ;;  %v896_v63 = vrot.slane %v770_v62, 2  ;;  %v650_v51 = vsel %vm577_vm3, %v648_v17, %v649_v59 }
 0x125   : > { %v652_v23 = vsel %vm577_vm3, %v649_v59, %v651_v44  ;;  %v1081_v18 = vmul.f32 %v2649_v25, %v3499_v19  ;;  %v1082_v31 = vmul.f32 %v2649_v25, %v3507_v8  ;;  %v718_v34 = vadd.f32 %v650_v51, %v441_v36 }
 0x126   : > { %2466 = vmatmul.mubr.msk.bf16.gmra.mrb[12].mxu0 %vm263_vm1, %v2086_v45  ;;  %v719_v43 = vadd.f32 %v652_v23, %v442_v38  ;;  %v895_v11 = vsel %vm822_vm4, %v893_v12, %v894_v52  ;;  %v897_v58 = vsel %vm822_vm4, %v894_v52, %v896_v63  ;;  %v1083_v37 = vmul.f32 %v2649_v25, %v3515_v55  ;;  %v3692_v1 = vld [vmem:[#allocation2 + $0x180] sm:$0xff] }
 0x127   : > { %v1205_v60 = vrot.slane %v1081_v18, 1  ;;  %v1206_v0 = vrot.slane %v1082_v31, 1  ;;  %v1325_v4 = vmul.f32 %v2652_v26, %v3499_v19  ;;  %v963_v9 = vadd.f32 %v895_v11, %v718_v34  ;;  %v3701_v24 = vld [vmem:[#allocation2 + $0x188] sm:$0xff]  ;;  %v3710_v40 = vld [vmem:[#allocation2 + $0x190] sm:$0x3] }
 0x128   : > { %v964_v29 = vadd.f32 %v897_v58, %v719_v43  ;;  %v1326_v42 = vmul.f32 %v2652_v26, %v3507_v8  ;;  %v1327_v6 = vmul.f32 %v2652_v26, %v3515_v55  ;;  %v1208_v20 = vrot.slane %v1083_v37, 1 }
 0x129   : > { %v1207_v7 = vsel %vm577_vm3, %v1205_v60, %v1206_v0  ;;  %v1449_v50 = vrot.slane %v1325_v4, 2  ;;  %v1555_v13 = vmul.f32 %v2655_v27, %v3692_v1  ;;  %v1031_v61 = vadd.f32 %v999_v53, %v963_v9 }
 0x12a   : > { %v1032_v30 = vadd.f32 %v1000_v56, %v964_v29  ;;  %v1450_v32 = vrot.slane %v1326_v42, 2  ;;  %v1452_v57 = vrot.slane %v1327_v6, 2  ;;  %v1209_v36 = vsel %vm577_vm3, %v1206_v0, %v1208_v20 }
 0x12b   : > { %v1556_v38 = vmul.f32 %v2655_v27, %v3701_v24  ;;  %v1637_v39 = vmul.f32 %v2665_v33, %v3692_v1  ;;  %v1638_v46 = vmul.f32 %v2665_v33, %v3701_v24  ;;  %v1275_v41 = vadd.f32 %v1207_v7, %v1031_v61 }
 0x12c   : > { %v1276_v47 = vadd.f32 %v1209_v36, %v1032_v30  ;;  %v1451_v35 = vsel %vm822_vm4, %v1449_v50, %v1450_v32  ;;  %v1453_v3 = vsel %vm822_vm4, %v1450_v32, %v1452_v57  ;;  %v1639_v10 = vmul.f32 %v2665_v33, %v3710_v40 }
 0x12d   : > { %v1761_v48 = vrot.slane %v1637_v39, 1  ;;  %v1762_v17 = vrot.slane %v1638_v46, 1  ;;  %v1881_v49 = vmul.f32 %v2693_v5, %v3692_v1  ;;  %v1519_v62 = vadd.f32 %v1451_v35, %v1275_v41 }
 0x12e   : > { %v1520_v59 = vadd.f32 %v1453_v3, %v1276_v47  ;;  %v1882_v44 = vmul.f32 %v2693_v5, %v3701_v24  ;;  %v1883_v12 = vmul.f32 %v2693_v5, %v3710_v40  ;;  %v1764_v45 = vrot.slane %v1639_v10, 1 }
 0x12f   : > { %v1763_v53 = vsel %vm577_vm3, %v1761_v48, %v1762_v17  ;;  %v2005_v52 = vrot.slane %v1881_v49, 2  ;;  %v443_v63 = vmul.f32 %v2639_v14, %v3499_v19  ;;  %v1587_v56 = vadd.f32 %v1555_v13, %v1519_v62  ;;  %v404_v48 = vld [vmem:[#allocation2 + $0x1a0] sm:$0xff] }
 0x130   : > { %v1588_v51 = vadd.f32 %v1556_v38, %v1520_v59  ;;  %v2006_v23 = vrot.slane %v1882_v44, 2  ;;  %v2008_v18 = vrot.slane %v1883_v12, 2  ;;  %v1765_v31 = vsel %vm577_vm3, %v1762_v17, %v1764_v45  ;;  %v405_v44 = vld [vmem:[#allocation2 + $0x1a8] sm:$0x3] }
 0x131   : > { %v444_v34 = vmul.f32 %v2639_v14, %v3507_v8  ;;  %v526_v43 = vmul.f32 %v2641_v15, %v3499_v19  ;;  %v527_v11 = vmul.f32 %v2641_v15, %v3507_v8  ;;  %v1831_v58 = vadd.f32 %v1763_v53, %v1587_v56 }
 0x132   : > { %v1832_v37 = vadd.f32 %v1765_v31, %v1588_v51  ;;  %v2007_v60 = vsel %vm822_vm4, %v2005_v52, %v2006_v23  ;;  %v2009_v0 = vsel %vm822_vm4, %v2006_v23, %v2008_v18  ;;  %v528_v4 = vmul.f32 %v2641_v15, %v3515_v55 }
 0x133   : > { %v653_v9 = vrot.slane %v526_v43, 1  ;;  %v654_v29 = vrot.slane %v527_v11, 1  ;;  %v771_v14 = vmul.f32 %v2644_v16, %v3499_v19  ;;  %v2075_v42 = vadd.f32 %v2007_v60, %v1831_v58  ;;  %v3775_v43 = vld [vmem:[%s3898_s3] ss:$0 sm:$0xff] }
 0x134   : > { %v2076_v6 = vadd.f32 %v2009_v0, %v1832_v37  ;;  %v772_v7 = vmul.f32 %v2644_v16, %v3507_v8  ;;  %v773_v20 = vmul.f32 %v2644_v16, %v3515_v55  ;;  %v656_v13 = vrot.slane %v528_v4, 1  ;;  %v403_v55 = vld [vmem:[#allocation2 + $0x198] sm:$0xff] }
 0x135   : > { %v655_v50 = vsel %vm577_vm3, %v653_v9, %v654_v29  ;;  %v898_v61 = vrot.slane %v771_v14, 2  ;;  %v1001_v15 = vmul.f32 %v2647_v21, %v3692_v1  ;;  %v1002_v38 = vmul.f32 %v2647_v21, %v3701_v24 }
 0x136   : > { %v2093_v30 = vpack.c.bf16 %v2076_v6, %v2075_v42  ;;  %v720_v32 = vadd.f32 %v655_v50, %v443_v63  ;;  %v899_v57 = vrot.slane %v772_v7, 2  ;;  %v901_v36 = vrot.slane %v773_v20, 2 }
 0x137   : > { %v657_v19 = vsel %vm577_vm3, %v654_v29, %v656_v13  ;;  %v1084_v8 = vmul.f32 %v2649_v25, %v3692_v1  ;;  %v1085_v16 = vmul.f32 %v2649_v25, %v3701_v24  ;;  %v1086_v47 = vmul.f32 %v2649_v25, %v3710_v40 }
 0x138   : > { %2481 = vmatprep.mubr.msk.bf16.mxu1 %vm263_vm1, %v2093_v30  ;;  %v721_v39 = vadd.f32 %v657_v19, %v444_v34  ;;  %v900_v46 = vsel %vm822_vm4, %v898_v61, %v899_v57  ;;  %v902_v41 = vsel %vm822_vm4, %v899_v57, %v901_v36  ;;  %v1328_v10 = vmul.f32 %v2652_v26, %v3692_v1 }
 0x139   : > { %v965_v35 = vadd.f32 %v900_v46, %v720_v32  ;;  %v1210_v3 = vrot.slane %v1084_v8, 1  ;;  %v1211_v21 = vrot.slane %v1085_v16, 1  ;;  %v1213_v49 = vrot.slane %v1086_v47, 1 }
 0x13a   : > { %v966_v17 = vadd.f32 %v902_v41, %v721_v39  ;;  %v1329_v62 = vmul.f32 %v2652_v26, %v3701_v24  ;;  %v1330_v59 = vmul.f32 %v2652_v26, %v3710_v40  ;;  %v1454_v25 = vrot.slane %v1328_v10, 2 }
 0x13b   : > { %v1033_v12 = vadd.f32 %v1001_v15, %v965_v35  ;;  %v1212_v53 = vsel %vm577_vm3, %v1210_v3, %v1211_v21  ;;  %v1557_v45 = vmul.f32 %v2655_v27, %v403_v55  ;;  %v1214_v63 = vsel %vm577_vm3, %v1211_v21, %v1213_v49 }
 0x13c   : > { %v1034_v52 = vadd.f32 %v1002_v38, %v966_v17  ;;  %v1455_v1 = vrot.slane %v1329_v62, 2  ;;  %v1457_v56 = vrot.slane %v1330_v59, 2  ;;  %v1558_v23 = vmul.f32 %v2655_v27, %v404_v48 }
 0x13d   : > { %v1277_v51 = vadd.f32 %v1212_v53, %v1033_v12  ;;  %v1640_v24 = vmul.f32 %v2665_v33, %v403_v55  ;;  %v1641_v18 = vmul.f32 %v2665_v33, %v404_v48  ;;  %v1642_v34 = vmul.f32 %v2665_v33, %v405_v44 }
 0x13e   : > { %v1278_v26 = vadd.f32 %v1214_v63, %v1034_v52  ;;  %v1456_v40 = vsel %vm822_vm4, %v1454_v25, %v1455_v1  ;;  %v1458_v31 = vsel %vm822_vm4, %v1455_v1, %v1457_v56  ;;  %v1884_v37 = vmul.f32 %v2693_v5, %v403_v55 }
 0x13f   : > { %v1521_v11 = vadd.f32 %v1456_v40, %v1277_v51  ;;  %v1766_v58 = vrot.slane %v1640_v24, 1  ;;  %v1767_v27 = vrot.slane %v1641_v18, 1  ;;  %v1769_v0 = vrot.slane %v1642_v34, 1 }
 0x140   : > { %v1522_v60 = vadd.f32 %v1458_v31, %v1278_v26  ;;  %v1885_v4 = vmul.f32 %v2693_v5, %v404_v48  ;;  %v1886_v9 = vmul.f32 %v2693_v5, %v405_v44  ;;  %v2010_v33 = vrot.slane %v1884_v37, 2 }
 0x141   : > { %v1589_v29 = vadd.f32 %v1557_v45, %v1521_v11  ;;  %v1768_v14 = vsel %vm577_vm3, %v1766_v58, %v1767_v27  ;;  %v2198_v42 = vadd.f32 %v3656_v2, %v3775_v43  ;;  %v1770_v7 = vsel %vm577_vm3, %v1767_v27, %v1769_v0 }
 0x142   : > { %v1590_v6 = vadd.f32 %v1558_v23, %v1522_v60  ;;  %v2011_v5 = vrot.slane %v1885_v4, 2  ;;  %v2013_v20 = vrot.slane %v1886_v9, 2  ;;  %v2190_v13 = vadd.f32 %v3775_v43, %v3665_v28 }
 0x143   : > { %v1833_v50 = vadd.f32 %v1768_v14, %v1589_v29  ;;  %v2201_v61 = vadd.f32 %v3671_v22, %v3775_v43  ;;  %2319 = vst.msk [vmem:[%s3786_s8 + $0x10] sm:$0xff] %vm2316_vm5, %v2198_v42  ;;  %v2193_v57 = vadd.f32 %v3775_v43, %v3675_v54 }
 0x144   : > { %v1834_v15 = vadd.f32 %v1770_v7, %v1590_v6  ;;  %v2012_v2 = vsel %vm822_vm4, %v2010_v33, %v2011_v5  ;;  %v2014_v30 = vsel %vm822_vm4, %v2011_v5, %v2013_v20  ;;  %v2471_v32 = vpop.f32.mrb[0].mxu1  ;;  %2317 = vst.msk [vmem:[%s3786_s8] sm:$0xff] %vm2316_vm5, %v2190_v13 }
 0x145   : > { %v2077_v36 = vadd.f32 %v2012_v2, %v1833_v50  ;;  %v2262_v28 = vadd.f32 %v2471_v32, %v3775_v43  ;;  %2320 = vst.msk [vmem:[%s3786_s8 + $0x18] sm:$0xff] %vm2316_vm5, %v2201_v61  ;;  %v2253_v22 = vpop.f32.mrb[1].mxu1  ;;  %2318 = vst.msk [vmem:[%s3786_s8 + $0x8] sm:$0xff] %vm2316_vm5, %v2193_v57 }
 0x146   : > { %v2078_v19 = vadd.f32 %v2014_v30, %v1834_v15  ;;  %v2254_v38 = vadd.f32 %v3775_v43, %v2253_v22  ;;  %v2472_v8 = vpop.f32.mrb[2].mxu1 }
 0x147   : > { %2335 = vst.msk [vmem:[%s3786_s8 + $0x90] sm:$0xff] %vm2316_vm5, %v2262_v28  ;;  %v2265_v54 = vadd.f32 %v2472_v8, %v3775_v43  ;;  %v2256_v16 = vpop.f32.mrb[3].mxu1 }
 0x148   : > { %v2094_v55 = vpack.c.bf16 %v2078_v19, %v2077_v36  ;;  %2333 = vst.msk [vmem:[%s3786_s8 + $0x80] sm:$0xff] %vm2316_vm5, %v2254_v38  ;;  %v2257_v39 = vadd.f32 %v3775_v43, %v2256_v16 }
 0x149   : > { %2336 = vst.msk [vmem:[%s3786_s8 + $0x98] sm:$0xff] %vm2316_vm5, %v2265_v54 }
 0x14a   : > { %2482 = vmatmul.mubr.msk.bf16.gmra.mrb[12].mxu1 %vm263_vm1, %v2094_v55  ;;  %2334 = vst.msk [vmem:[%s3786_s8 + $0x88] sm:$0xff] %vm2316_vm5, %v2257_v39 }
 0x168   : > { %v2459_v46 = vpop.f32.mrb[4].mxu0 }
 0x169   : > { %v2214_v41 = vadd.f32 %v2459_v46, %v3775_v43  ;;  %v2205_v47 = vpop.f32.mrb[5].mxu0 }
 0x16a   : > { %v2206_v35 = vadd.f32 %v3775_v43, %v2205_v47  ;;  %v2460_v3 = vpop.f32.mrb[6].mxu0 }
 0x16b   : > { %2323 = vst.msk [vmem:[%s3786_s8 + $0x30] sm:$0xff] %vm2316_vm5, %v2214_v41  ;;  %v2217_v21 = vadd.f32 %v2460_v3, %v3775_v43  ;;  %v2208_v10 = vpop.f32.mrb[7].mxu0 }
 0x16c   : > { %2321 = vst.msk [vmem:[%s3786_s8 + $0x20] sm:$0xff] %vm2316_vm5, %v2206_v35  ;;  %v2209_v48 = vadd.f32 %v3775_v43, %v2208_v10 }
 0x16d   : > { %2324 = vst.msk [vmem:[%s3786_s8 + $0x38] sm:$0xff] %vm2316_vm5, %v2217_v21 }
 0x16e   : > { %2322 = vst.msk [vmem:[%s3786_s8 + $0x28] sm:$0xff] %vm2316_vm5, %v2209_v48 }
 0x18c   : > { %v2475_v17 = vpop.f32.mrb[4].mxu1 }
 0x18d   : > { %v2278_v49 = vadd.f32 %v2475_v17, %v3775_v43  ;;  %v2269_v62 = vpop.f32.mrb[5].mxu1 }
 0x18e   : > { %v2270_v59 = vadd.f32 %v3775_v43, %v2269_v62  ;;  %v2476_v44 = vpop.f32.mrb[6].mxu1 }
 0x18f   : > { %2339 = vst.msk [vmem:[%s3786_s8 + $0xb0] sm:$0xff] %vm2316_vm5, %v2278_v49  ;;  %v2281_v12 = vadd.f32 %v2476_v44, %v3775_v43  ;;  %v2272_v53 = vpop.f32.mrb[7].mxu1 }
 0x190   : > { %2337 = vst.msk [vmem:[%s3786_s8 + $0xa0] sm:$0xff] %vm2316_vm5, %v2270_v59  ;;  %v2273_v25 = vadd.f32 %v3775_v43, %v2272_v53 }
 0x191   : > { %2340 = vst.msk [vmem:[%s3786_s8 + $0xb8] sm:$0xff] %vm2316_vm5, %v2281_v12 }
 0x192   : > { %2338 = vst.msk [vmem:[%s3786_s8 + $0xa8] sm:$0xff] %vm2316_vm5, %v2273_v25 }
 0x1b0   : > { %v2463_v45 = vpop.f32.mrb[8].mxu0 }
 0x1b1   : > { %v2230_v52 = vadd.f32 %v2463_v45, %v3775_v43  ;;  %v2221_v63 = vpop.f32.mrb[9].mxu0 }
 0x1b2   : > { %v2222_v1 = vadd.f32 %v3775_v43, %v2221_v63  ;;  %v2464_v56 = vpop.f32.mrb[10].mxu0 }
 0x1b3   : > { %2327 = vst.msk [vmem:[%s3786_s8 + $0x50] sm:$0xff] %vm2316_vm5, %v2230_v52  ;;  %v2233_v51 = vadd.f32 %v2464_v56, %v3775_v43  ;;  %v2224_v23 = vpop.f32.mrb[11].mxu0 }
 0x1b4   : > { %2325 = vst.msk [vmem:[%s3786_s8 + $0x40] sm:$0xff] %vm2316_vm5, %v2222_v1  ;;  %v2225_v24 = vadd.f32 %v3775_v43, %v2224_v23 }
 0x1b5   : > { %2328 = vst.msk [vmem:[%s3786_s8 + $0x58] sm:$0xff] %vm2316_vm5, %v2233_v51 }
 0x1b6   : > { %2326 = vst.msk [vmem:[%s3786_s8 + $0x48] sm:$0xff] %vm2316_vm5, %v2225_v24 }
 0x1d5   : > { %v2479_v18 = vpop.f32.mrb[8].mxu1 }
 0x1d6   : > { %v2294_v26 = vadd.f32 %v2479_v18, %v3775_v43  ;;  %v2285_v40 = vpop.f32.mrb[9].mxu1 }
 0x1d7   : > { %v2286_v31 = vadd.f32 %v3775_v43, %v2285_v40  ;;  %v2480_v34 = vpop.f32.mrb[10].mxu1 }
 0x1d8   : > { %2343 = vst.msk [vmem:[%s3786_s8 + $0xd0] sm:$0xff] %vm2316_vm5, %v2294_v26  ;;  %v2297_v11 = vadd.f32 %v2480_v34, %v3775_v43  ;;  %v2288_v58 = vpop.f32.mrb[11].mxu1 }
 0x1d9   : > { %2341 = vst.msk [vmem:[%s3786_s8 + $0xc0] sm:$0xff] %vm2316_vm5, %v2286_v31  ;;  %v2289_v27 = vadd.f32 %v3775_v43, %v2288_v58 }
 0x1da   : > { %2344 = vst.msk [vmem:[%s3786_s8 + $0xd8] sm:$0xff] %vm2316_vm5, %v2297_v11 }
 0x1db   : > { %2342 = vst.msk [vmem:[%s3786_s8 + $0xc8] sm:$0xff] %vm2316_vm5, %v2289_v27 }
 0x1f9   : > { %v2467_v37 = vpop.f32.mrb[12].mxu0 }
 0x1fa   : > { %v2246_v60 = vadd.f32 %v2467_v37, %v3775_v43  ;;  %v2237_v0 = vpop.f32.mrb[13].mxu0 }
 0x1fb   : > { %v2238_v4 = vadd.f32 %v3775_v43, %v2237_v0  ;;  %v2468_v9 = vpop.f32.mrb[14].mxu0 }
 0x1fc   : > { %2331 = vst.msk [vmem:[%s3786_s8 + $0x70] sm:$0xff] %vm2316_vm5, %v2246_v60  ;;  %v2249_v29 = vadd.f32 %v2468_v9, %v3775_v43  ;;  %v2240_v14 = vpop.f32.mrb[15].mxu0 }
 0x1fd   : > { %2329 = vst.msk [vmem:[%s3786_s8 + $0x60] sm:$0xff] %vm2316_vm5, %v2238_v4  ;;  %v2241_v33 = vadd.f32 %v3775_v43, %v2240_v14 }
 0x1fe   : > { %2332 = vst.msk [vmem:[%s3786_s8 + $0x78] sm:$0xff] %vm2316_vm5, %v2249_v29 }
 0x1ff   : > { %2330 = vst.msk [vmem:[%s3786_s8 + $0x68] sm:$0xff] %vm2316_vm5, %v2241_v33 }
 0x21d   : > { %v2483_v42 = vpop.f32.mrb[12].mxu1 }
 0x21e   : > { %v2310_v6 = vadd.f32 %v2483_v42, %v3775_v43  ;;  %v2301_v7 = vpop.f32.mrb[13].mxu1 }
 0x21f   : > { %v2302_v5 = vadd.f32 %v3775_v43, %v2301_v7  ;;  %v2484_v20 = vpop.f32.mrb[14].mxu1 }
 0x220   : > { %2347 = vst.msk [vmem:[%s3786_s8 + $0xf0] sm:$0xff] %vm2316_vm5, %v2310_v6  ;;  %v2313_v50 = vadd.f32 %v2484_v20, %v3775_v43  ;;  %v2304_v13 = vpop.f32.mrb[15].mxu1 }
 0x221   : > { %2345 = vst.msk [vmem:[%s3786_s8 + $0xe0] sm:$0xff] %vm2316_vm5, %v2302_v5  ;;  %v2305_v61 = vadd.f32 %v3775_v43, %v2304_v13 }
 0x222   : > { %2348 = vst.msk [vmem:[%s3786_s8 + $0xf8] sm:$0xff] %vm2316_vm5, %v2313_v50 }
 0x223   : > { %2346 = vst.msk [vmem:[%s3786_s8 + $0xe8] sm:$0xff] %vm2316_vm5, %v2305_v61 }
 0x224 PF: > { %s14_s15 = sadd.s32 1, %s2510_s15  }
 0x225   : > { %p11_p4 = scmp.ge.s32.totalorder %s14_s15, 4  }
 0x227   :  { %13 = sbr.rel (!%p11_p4) target bundleno = 1 (0x1), region = 67 }

</bundles_post_ra>
